<compile_context>
chip_gen: v7x
topology: tpu7x:2x2x1
jax: 0.10.0
libtpu: 0.0.40
codegen_flags: <defaults>
</compile_context>

<pallas_src>
import math
import jax
import jax.numpy as jnp
import numpy as np
from jax.experimental import pallas as pl
from jax.experimental.pallas import tpu as pltpu

IN_SIZE = 16
OUT_SIZE = 32
HEAD_NUM = 4
KEY_SIZE = OUT_SIZE // HEAD_NUM
MIN_VALUE = float(np.finfo(np.float32).min) / 2.0   # torch.finfo(float32).min / 2
LN_EPS = 1e-5


def _self_attn_kernel(x_ref, mask_ref, wqkv_ref, bqkv_ref, wo_ref, bo_ref,
                      g_ref, gamma_ref, beta_ref, out_ref, atten_ref):
    Bb, L, F = x_ref.shape
    mm_dtype = wqkv_ref.dtype          # bf16 on v6e/v7x path, f32 otherwise

    # Flatten the batch-block rows so every matmul / LN works on [Bb*L, .] tiles.
    xf = x_ref[...].reshape(Bb * L, F)

    # Fused QKV projection (scale folded into Wq / bq by the wrapper).
    qkv = jnp.dot(xf, wqkv_ref[...], preferred_element_type=jnp.float32) + bqkv_ref[...]
    q = qkv[:, :OUT_SIZE].reshape(Bb, L, OUT_SIZE)
    k = qkv[:, OUT_SIZE:2 * OUT_SIZE].reshape(Bb, L, OUT_SIZE)
    v = qkv[:, 2 * OUT_SIZE:].reshape(Bb, L, OUT_SIZE)

    # Hoisted mask predicate: (mask == 0).unsqueeze(-2), shared by all heads.
    neg_mask = (mask_ref[...] == 0.0)[:, None, :, :]          # (Bb, 1, 1, L)

    # All-head scores, one batched masked softmax, one attention store.
    scores = jnp.stack(
        [jnp.einsum('blk,bmk->blm',
                    q[..., h * KEY_SIZE:(h + 1) * KEY_SIZE].astype(mm_dtype),
                    k[..., h * KEY_SIZE:(h + 1) * KEY_SIZE].astype(mm_dtype),
                    preferred_element_type=jnp.float32)
         for h in range(HEAD_NUM)],
        axis=1)                                               # (Bb, H, L, L)
    scores = jnp.where(neg_mask, MIN_VALUE, scores)
    m = jnp.max(scores, axis=-1, keepdims=True)
    e = jnp.exp(scores - m)
    denom = jnp.sum(e, axis=-1, keepdims=True)
    atten = e * pl.reciprocal(denom, approx=True)
    atten_ref[...] = atten

    # bypass (nearest interpolate as one-hot gather matmul) seeds the output
    # accumulator; each head's (atten @ v) is folded through Wo[h] and
    # accumulated -- no concatenate of head values.
    acc = jnp.dot(xf, g_ref[...], preferred_element_type=jnp.float32) + bo_ref[...]
    for h in range(HEAD_NUM):
        vh = v[..., h * KEY_SIZE:(h + 1) * KEY_SIZE].astype(mm_dtype)
        hv = jnp.einsum('blm,bmk->blk', atten[:, h].astype(mm_dtype), vh,
                        preferred_element_type=jnp.float32)   # (Bb, L, K)
        acc = acc + jnp.dot(hv.reshape(Bb * L, KEY_SIZE).astype(mm_dtype),
                            wo_ref[h], preferred_element_type=jnp.float32)

    # LayerNorm in f32 on the flattened rows.
    mean = jnp.mean(acc, axis=-1, keepdims=True)
    var = jnp.mean(jnp.square(acc - mean), axis=-1, keepdims=True)
    out = (acc - mean) * jax.lax.rsqrt(var + LN_EPS) * gamma_ref[...] + beta_ref[...]
    out_ref[...] = out.reshape(Bb, L, OUT_SIZE)


def self_attention(x, mask, params, *, block_b=None, use_bf16_matmul=False):
    B, L, F = x.shape
    assert F == IN_SIZE
    if mask is None:
        mask = jnp.ones((B, L), dtype=jnp.float32)
    mask3 = mask.reshape(B, 1, L).astype(jnp.float32)

    scale = 1.0 / math.sqrt(KEY_SIZE)
    # Pre-transpose weights (head-stacked [H, key, F] -> [F, OUT]); fold softmax
    # scale into Wq/bq; fuse Q|K|V into one [F, 3*OUT] weight.
    wq_t = params["wq"].reshape(OUT_SIZE, F).T * scale
    wk_t = params["wk"].reshape(OUT_SIZE, F).T
    wv_t = params["wv"].reshape(OUT_SIZE, F).T
    wqkv = jnp.concatenate([wq_t, wk_t, wv_t], axis=1)                   # [F, 3*OUT]
    bqkv = jnp.concatenate([params["bq"].reshape(-1) * scale,
                            params["bk"].reshape(-1),
                            params["bv"].reshape(-1)]).reshape(1, 3 * OUT_SIZE)
    # Output projection split into per-head row blocks: wo_h[h] = Wo.T[h*K:(h+1)*K, :]
    wo_h = params["wo"].T.reshape(HEAD_NUM, KEY_SIZE, OUT_SIZE)
    bo = params["bo"].reshape(1, OUT_SIZE)
    gamma = params["gamma"].reshape(1, OUT_SIZE)
    beta = params["beta"].reshape(1, OUT_SIZE)

    # Nearest-neighbor interpolation gather matrix: out[:, j] = x[:, (j*F)//OUT]
    src_idx = (jnp.arange(OUT_SIZE) * F) // OUT_SIZE
    g = jax.nn.one_hot(src_idx, F, dtype=jnp.float32).T                  # [F, OUT]

    # bf16 MXU operands (v6e/v7x); biases / mask / LN params stay f32.
    mm_dtype = jnp.bfloat16 if use_bf16_matmul else jnp.float32
    x_in = x.astype(mm_dtype)
    wqkv = wqkv.astype(mm_dtype)
    wo_h = wo_h.astype(mm_dtype)
    g = g.astype(mm_dtype)

    # Batch-block size: amortize per-step overhead by packing several batch rows
    # per grid step. Exposed so callers can size it for VMEM (v7x: 64 MiB) and
    # keep >=2 grid steps for dual-TensorCore sharding when B allows.
    if block_b is None:
        cap = min(8, B)
        block_b = max(d for d in range(1, cap + 1) if B % d == 0)
    assert B % block_b == 0, "block_b must divide B"
    grid = (B // block_b,)

    def bcast(shape):
        if len(shape) == 2:
            return pl.BlockSpec(shape, lambda b: (0, 0))
        return pl.BlockSpec(shape, lambda b: (0, 0, 0))

    out, atten = pl.pallas_call(
        _self_attn_kernel,
        out_shape=[
            jax.ShapeDtypeStruct((B, L, OUT_SIZE), jnp.float32),
            jax.ShapeDtypeStruct((B, HEAD_NUM, L, L), jnp.float32),
        ],
        grid=grid,
        in_specs=[
            pl.BlockSpec((block_b, L, F), lambda b: (b, 0, 0)),          # x
            pl.BlockSpec((block_b, 1, L), lambda b: (b, 0, 0)),          # mask
            bcast((F, 3 * OUT_SIZE)), bcast((1, 3 * OUT_SIZE)),          # fused Wqkv, bqkv
            bcast((HEAD_NUM, KEY_SIZE, OUT_SIZE)), bcast((1, OUT_SIZE)), # Wo (per head), bo
            bcast((F, OUT_SIZE)),                                        # interp gather matrix
            bcast((1, OUT_SIZE)), bcast((1, OUT_SIZE)),                  # LN gamma, beta
        ],
        out_specs=[
            pl.BlockSpec((block_b, L, OUT_SIZE), lambda b: (b, 0, 0)),
            pl.BlockSpec((block_b, HEAD_NUM, L, L), lambda b: (b, 0, 0, 0)),
        ],
        compiler_params=pltpu.CompilerParams(dimension_semantics=("parallel",)),
    )(x_in, mask3, wqkv, bqkv, wo_h, bo, g, gamma, beta)
    # TODO(synk): atten keeps the module's [B, H, L, L] layout (last dim L<128);
    # a lane-dense layout would speed the writeback but changes the contract.
    return out, atten


def reference(x, mask, params):
    """Pure-JAX reference mirroring the PyTorch forward."""
    with jax.default_matmul_precision("highest"):
        B, L, F = x.shape
        wq_t = params["wq"].reshape(OUT_SIZE, F).T
        wk_t = params["wk"].reshape(OUT_SIZE, F).T
        wv_t = params["wv"].reshape(OUT_SIZE, F).T
        q = x @ wq_t + params["bq"].reshape(-1)
        k = x @ wk_t + params["bk"].reshape(-1)
        v = x @ wv_t + params["bv"].reshape(-1)
        attens, vals = [], []
        for h in range(HEAD_NUM):
            sl = slice(h * KEY_SIZE, (h + 1) * KEY_SIZE)
            score = jnp.einsum("blk,bmk->blm", q[..., sl], k[..., sl]) / math.sqrt(KEY_SIZE)
            score = jnp.where((mask == 0.0)[:, None, :], MIN_VALUE, score)
            atten = jax.nn.softmax(score, axis=-1)
            attens.append(atten)
            vals.append(jnp.einsum("blm,bmk->blk", atten, v[..., sl]))
        atten = jnp.stack(attens, axis=-3)
        value = jnp.concatenate(vals, axis=-1) @ params["wo"].T + params["bo"]
        src_idx = (jnp.arange(OUT_SIZE) * F) // OUT_SIZE
        bypass = x[..., src_idx]
        s = bypass + value
        mean = jnp.mean(s, axis=-1, keepdims=True)
        var = jnp.mean(jnp.square(s - mean), axis=-1, keepdims=True)
        out = (s - mean) / jnp.sqrt(var + LN_EPS) * params["gamma"] + params["beta"]
        return out, atten


if __name__ == "__main__":
    B, L = 4, 8
    key = jax.random.PRNGKey(0)
    ks = jax.random.split(key, 10)
    params = {
        "wq": jax.random.normal(ks[0], (HEAD_NUM, KEY_SIZE, IN_SIZE), jnp.float32) * 0.1,
        "bq": jax.random.normal(ks[1], (HEAD_NUM, KEY_SIZE), jnp.float32) * 0.1,
        "wk": jax.random.normal(ks[2], (HEAD_NUM, KEY_SIZE, IN_SIZE), jnp.float32) * 0.1,
        "bk": jax.random.normal(ks[3], (HEAD_NUM, KEY_SIZE), jnp.float32) * 0.1,
        "wv": jax.random.normal(ks[4], (HEAD_NUM, KEY_SIZE, IN_SIZE), jnp.float32) * 0.1,
        "bv": jax.random.normal(ks[5], (HEAD_NUM, KEY_SIZE), jnp.float32) * 0.1,
        "wo": jax.random.normal(ks[6], (OUT_SIZE, OUT_SIZE), jnp.float32) * 0.1,
        "bo": jax.random.normal(ks[7], (OUT_SIZE,), jnp.float32) * 0.1,
        "gamma": jnp.ones((OUT_SIZE,), jnp.float32),
        "beta": jnp.zeros((OUT_SIZE,), jnp.float32),
    }
    x = jax.random.normal(ks[8], (B, L, IN_SIZE), jnp.float32)
    mask = jnp.ones((B, L), jnp.float32).at[1, 6:].set(0.0).at[3, 5:].set(0.0)

    # f32 path: 2 batch rows per block -> 2 grid steps (exercises the batched block
    # and the parallel grid).
    out, atten = self_attention(x, mask, params, block_b=2)
    jax.block_until_ready((out, atten))

    out_r, atten_r = reference(x, mask, params)
    np.testing.assert_allclose(np.asarray(out), np.asarray(out_r), rtol=2e-3, atol=2e-3)
    np.testing.assert_allclose(np.asarray(atten), np.asarray(atten_r), rtol=2e-3, atol=2e-3)

    # bf16 MXU-operand variant (v6e / v7x optimization); softmax & LayerNorm stay
    # in f32 in-kernel, so only matmul-operand rounding differs -> looser tolerance.
    out_bf, atten_bf = self_attention(x, mask, params, block_b=2, use_bf16_matmul=True)
    jax.block_until_ready((out_bf, atten_bf))
    np.testing.assert_allclose(np.asarray(out_bf), np.asarray(out_r), rtol=5e-2, atol=5e-2)
    np.testing.assert_allclose(np.asarray(atten_bf), np.asarray(atten_r), rtol=5e-2, atol=5e-2)

    print("KERNEL_OK")
</pallas_src>

<mosaic_0001>
module attributes {stable_mosaic.version = 11 : i64} {
  func.func @_self_attn_kernel(%arg0: i32, %arg1: memref<2x8x16xf32, #tpu.memory_space<vmem>>, %arg2: memref<2x1x8xf32, #tpu.memory_space<vmem>>, %arg3: memref<16x96xf32, #tpu.memory_space<vmem>>, %arg4: memref<1x96xf32, #tpu.memory_space<vmem>>, %arg5: memref<4x8x32xf32, #tpu.memory_space<vmem>>, %arg6: memref<1x32xf32, #tpu.memory_space<vmem>>, %arg7: memref<16x32xf32, #tpu.memory_space<vmem>>, %arg8: memref<1x32xf32, #tpu.memory_space<vmem>>, %arg9: memref<1x32xf32, #tpu.memory_space<vmem>>, %arg10: memref<2x8x32xf32, #tpu.memory_space<vmem>>, %arg11: memref<2x4x8x8xf32, #tpu.memory_space<vmem>>) attributes {dimension_semantics = [#tpu.dimension_semantics<parallel>], iteration_bounds = array<i64: 2>, scalar_prefetch = 0 : i64, scratch_operands = 0 : i64, tpu.core_type = #tpu.core_type<tc>, window_params = [{transform_indices = @transform_0, window_bounds = array<i64: 2, 8, 16>}, {transform_indices = @transform_1, window_bounds = array<i64: 2, 1, 8>}, {pipeline_mode = #tpu.pipeline_mode<synchronous>, transform_indices = @transform_2, window_bounds = array<i64: 16, 96>}, {pipeline_mode = #tpu.pipeline_mode<synchronous>, transform_indices = @transform_3, window_bounds = array<i64: 1, 96>}, {pipeline_mode = #tpu.pipeline_mode<synchronous>, transform_indices = @transform_4, window_bounds = array<i64: 4, 8, 32>}, {pipeline_mode = #tpu.pipeline_mode<synchronous>, transform_indices = @transform_5, window_bounds = array<i64: 1, 32>}, {pipeline_mode = #tpu.pipeline_mode<synchronous>, transform_indices = @transform_6, window_bounds = array<i64: 16, 32>}, {pipeline_mode = #tpu.pipeline_mode<synchronous>, transform_indices = @transform_7, window_bounds = array<i64: 1, 32>}, {pipeline_mode = #tpu.pipeline_mode<synchronous>, transform_indices = @transform_8, window_bounds = array<i64: 1, 32>}, {transform_indices = @transform_9, window_bounds = array<i64: 2, 8, 32>}, {transform_indices = @transform_10, window_bounds = array<i64: 2, 4, 8, 8>}]} {
    %c0 = arith.constant 0 : index
    %c0_0 = arith.constant 0 : index
    %c0_1 = arith.constant 0 : index
    %0 = vector.load %arg1[%c0, %c0_0, %c0_1] : memref<2x8x16xf32, #tpu.memory_space<vmem>>, vector<2x8x16xf32>
    %1 = vector.shape_cast %0 : vector<2x8x16xf32> to vector<16x16xf32>
    %c0_2 = arith.constant 0 : index
    %c0_3 = arith.constant 0 : index
    %2 = vector.load %arg3[%c0_2, %c0_3] : memref<16x96xf32, #tpu.memory_space<vmem>>, vector<16x96xf32>
    %cst = arith.constant dense<0.000000e+00> : vector<16x96xf32>
    %3 = tpu.matmul %1, %2, %cst {dimension_numbers = #tpu.dot_dimension_numbers<[1], [0], [0], [1], [0, 0, 1, 1], [], []>} : vector<16x16xf32>, vector<16x96xf32>, vector<16x96xf32> -> vector<16x96xf32>
    %c0_4 = arith.constant 0 : index
    %c0_5 = arith.constant 0 : index
    %4 = vector.load %arg4[%c0_4, %c0_5] : memref<1x96xf32, #tpu.memory_space<vmem>>, vector<1x96xf32>
    %5 = vector.broadcast %4 : vector<1x96xf32> to vector<16x96xf32>
    %6 = arith.addf %3, %5 : vector<16x96xf32>
    %7 = vector.extract_strided_slice %6 {offsets = [0, 0], sizes = [16, 32], strides = [1, 1]} : vector<16x96xf32> to vector<16x32xf32>
    %8 = vector.shape_cast %7 : vector<16x32xf32> to vector<2x8x32xf32>
    %9 = vector.extract_strided_slice %6 {offsets = [0, 32], sizes = [16, 32], strides = [1, 1]} : vector<16x96xf32> to vector<16x32xf32>
    %10 = vector.shape_cast %9 : vector<16x32xf32> to vector<2x8x32xf32>
    %11 = vector.extract_strided_slice %6 {offsets = [0, 64], sizes = [16, 32], strides = [1, 1]} : vector<16x96xf32> to vector<16x32xf32>
    %12 = vector.shape_cast %11 : vector<16x32xf32> to vector<2x8x32xf32>
    %c0_6 = arith.constant 0 : index
    %c0_7 = arith.constant 0 : index
    %c0_8 = arith.constant 0 : index
    %13 = vector.load %arg2[%c0_6, %c0_7, %c0_8] : memref<2x1x8xf32, #tpu.memory_space<vmem>>, vector<2x1x8xf32>
    %cst_9 = arith.constant 0.000000e+00 : f32
    %14 = vector.broadcast %cst_9 : f32 to vector<2x1x8xf32>
    %15 = arith.cmpf oeq, %13, %14 : vector<2x1x8xf32>
    %16 = vector.shape_cast %15 : vector<2x1x8xi1> to vector<2x1x1x8xi1>
    %17 = vector.extract_strided_slice %8 {offsets = [0, 0, 0], sizes = [2, 8, 8], strides = [1, 1, 1]} : vector<2x8x32xf32> to vector<2x8x8xf32>
    %18 = vector.extract_strided_slice %10 {offsets = [0, 0, 0], sizes = [2, 8, 8], strides = [1, 1, 1]} : vector<2x8x32xf32> to vector<2x8x8xf32>
    "tpu.trace_start"() <{level = 10 : i32, message = "blk,bmk->blm"}> : () -> ()
    %cst_10 = arith.constant dense<0.000000e+00> : vector<2x8x8xf32>
    %19 = tpu.matmul %17, %18, %cst_10 {dimension_numbers = #tpu.dot_dimension_numbers<[2], [2], [1], [1], [0, 0, 0, 1, 1, 1], [0], [0]>} : vector<2x8x8xf32>, vector<2x8x8xf32>, vector<2x8x8xf32> -> vector<2x8x8xf32>
    "tpu.trace_stop"() : () -> ()
    %20 = vector.extract_strided_slice %8 {offsets = [0, 0, 8], sizes = [2, 8, 8], strides = [1, 1, 1]} : vector<2x8x32xf32> to vector<2x8x8xf32>
    %21 = vector.extract_strided_slice %10 {offsets = [0, 0, 8], sizes = [2, 8, 8], strides = [1, 1, 1]} : vector<2x8x32xf32> to vector<2x8x8xf32>
    "tpu.trace_start"() <{level = 10 : i32, message = "blk,bmk->blm"}> : () -> ()
    %cst_11 = arith.constant dense<0.000000e+00> : vector<2x8x8xf32>
    %22 = tpu.matmul %20, %21, %cst_11 {dimension_numbers = #tpu.dot_dimension_numbers<[2], [2], [1], [1], [0, 0, 0, 1, 1, 1], [0], [0]>} : vector<2x8x8xf32>, vector<2x8x8xf32>, vector<2x8x8xf32> -> vector<2x8x8xf32>
    "tpu.trace_stop"() : () -> ()
    %23 = vector.extract_strided_slice %8 {offsets = [0, 0, 16], sizes = [2, 8, 8], strides = [1, 1, 1]} : vector<2x8x32xf32> to vector<2x8x8xf32>
    %24 = vector.extract_strided_slice %10 {offsets = [0, 0, 16], sizes = [2, 8, 8], strides = [1, 1, 1]} : vector<2x8x32xf32> to vector<2x8x8xf32>
    "tpu.trace_start"() <{level = 10 : i32, message = "blk,bmk->blm"}> : () -> ()
    %cst_12 = arith.constant dense<0.000000e+00> : vector<2x8x8xf32>
    %25 = tpu.matmul %23, %24, %cst_12 {dimension_numbers = #tpu.dot_dimension_numbers<[2], [2], [1], [1], [0, 0, 0, 1, 1, 1], [0], [0]>} : vector<2x8x8xf32>, vector<2x8x8xf32>, vector<2x8x8xf32> -> vector<2x8x8xf32>
    "tpu.trace_stop"() : () -> ()
    %26 = vector.extract_strided_slice %8 {offsets = [0, 0, 24], sizes = [2, 8, 8], strides = [1, 1, 1]} : vector<2x8x32xf32> to vector<2x8x8xf32>
    %27 = vector.extract_strided_slice %10 {offsets = [0, 0, 24], sizes = [2, 8, 8], strides = [1, 1, 1]} : vector<2x8x32xf32> to vector<2x8x8xf32>
    "tpu.trace_start"() <{level = 10 : i32, message = "blk,bmk->blm"}> : () -> ()
    %cst_13 = arith.constant dense<0.000000e+00> : vector<2x8x8xf32>
    %28 = tpu.matmul %26, %27, %cst_13 {dimension_numbers = #tpu.dot_dimension_numbers<[2], [2], [1], [1], [0, 0, 0, 1, 1, 1], [0], [0]>} : vector<2x8x8xf32>, vector<2x8x8xf32>, vector<2x8x8xf32> -> vector<2x8x8xf32>
    "tpu.trace_stop"() : () -> ()
    %29 = vector.shape_cast %19 : vector<2x8x8xf32> to vector<2x1x8x8xf32>
    %30 = vector.shape_cast %22 : vector<2x8x8xf32> to vector<2x1x8x8xf32>
    %31 = vector.shape_cast %25 : vector<2x8x8xf32> to vector<2x1x8x8xf32>
    %32 = vector.shape_cast %28 : vector<2x8x8xf32> to vector<2x1x8x8xf32>
    %33 = tpu.concatenate %29, %30, %31, %32 in 1 : vector<2x1x8x8xf32>, vector<2x1x8x8xf32>, vector<2x1x8x8xf32>, vector<2x1x8x8xf32> -> vector<2x4x8x8xf32>
    %cst_14 = arith.constant -1.70141173E+38 : f32
    %34 = vector.shape_cast %16 : vector<2x1x1x8xi1> to vector<2x1x1x8xi1>
    %35 = vector.broadcast %34 : vector<2x1x1x8xi1> to vector<2x4x8x8xi1>
    %36 = vector.broadcast %cst_14 : f32 to vector<2x4x8x8xf32>
    %37 = arith.select %35, %36, %33 : vector<2x4x8x8xi1>, vector<2x4x8x8xf32>
    %cst_15 = arith.constant dense<0xFF800000> : vector<2x4x8xf32>
    %38 = vector.multi_reduction <maximumf>, %37, %cst_15 [3] : vector<2x4x8x8xf32> to vector<2x4x8xf32>
    %39 = vector.shape_cast %38 : vector<2x4x8xf32> to vector<2x4x8x1xf32>
    %40 = vector.broadcast %39 : vector<2x4x8x1xf32> to vector<2x4x8x8xf32>
    %41 = arith.subf %37, %40 : vector<2x4x8x8xf32>
    %42 = math.exp %41 : vector<2x4x8x8xf32>
    %cst_16 = arith.constant dense<0.000000e+00> : vector<2x4x8xf32>
    %43 = vector.multi_reduction <add>, %42, %cst_16 [3] : vector<2x4x8x8xf32> to vector<2x4x8xf32>
    %44 = vector.shape_cast %43 : vector<2x4x8xf32> to vector<2x4x8x1xf32>
    %45 = tpu.reciprocal %44 {approx = true} : vector<2x4x8x1xf32> -> vector<2x4x8x1xf32>
    %46 = vector.broadcast %45 : vector<2x4x8x1xf32> to vector<2x4x8x8xf32>
    %47 = arith.mulf %42, %46 : vector<2x4x8x8xf32>
    %c0_17 = arith.constant 0 : index
    %c0_18 = arith.constant 0 : index
    %c0_19 = arith.constant 0 : index
    %c0_20 = arith.constant 0 : index
    %48 = vector.load %arg11[%c0_17, %c0_18, %c0_19, %c0_20] : memref<2x4x8x8xf32, #tpu.memory_space<vmem>>, vector<2x4x8x8xf32>
    tpu.vector_store %arg11[%c0_17, %c0_18, %c0_19, %c0_20], %47 {strides = array<i32>} : memref<2x4x8x8xf32, #tpu.memory_space<vmem>>, vector<2x4x8x8xf32>,
    %c0_21 = arith.constant 0 : index
    %c0_22 = arith.constant 0 : index
    %49 = vector.load %arg7[%c0_21, %c0_22] : memref<16x32xf32, #tpu.memory_space<vmem>>, vector<16x32xf32>
    %cst_23 = arith.constant dense<0.000000e+00> : vector<16x32xf32>
    %50 = tpu.matmul %1, %49, %cst_23 {dimension_numbers = #tpu.dot_dimension_numbers<[1], [0], [0], [1], [0, 0, 1, 1], [], []>} : vector<16x16xf32>, vector<16x32xf32>, vector<16x32xf32> -> vector<16x32xf32>
    %c0_24 = arith.constant 0 : index
    %c0_25 = arith.constant 0 : index
    %51 = vector.load %arg6[%c0_24, %c0_25] : memref<1x32xf32, #tpu.memory_space<vmem>>, vector<1x32xf32>
    %52 = vector.broadcast %51 : vector<1x32xf32> to vector<16x32xf32>
    %53 = arith.addf %50, %52 : vector<16x32xf32>
    %54 = vector.extract_strided_slice %12 {offsets = [0, 0, 0], sizes = [2, 8, 8], strides = [1, 1, 1]} : vector<2x8x32xf32> to vector<2x8x8xf32>
    %55 = vector.extract_strided_slice %47 {offsets = [0, 0, 0, 0], sizes = [2, 1, 8, 8], strides = [1, 1, 1, 1]} : vector<2x4x8x8xf32> to vector<2x1x8x8xf32>
    %56 = vector.shape_cast %55 : vector<2x1x8x8xf32> to vector<2x8x8xf32>
    "tpu.trace_start"() <{level = 10 : i32, message = "blm,bmk->blk"}> : () -> ()
    %cst_26 = arith.constant dense<0.000000e+00> : vector<2x8x8xf32>
    %57 = tpu.matmul %56, %54, %cst_26 {dimension_numbers = #tpu.dot_dimension_numbers<[2], [1], [1], [2], [0, 0, 0, 1, 1, 2], [0], [0]>} : vector<2x8x8xf32>, vector<2x8x8xf32>, vector<2x8x8xf32> -> vector<2x8x8xf32>
    "tpu.trace_stop"() : () -> ()
    %58 = vector.shape_cast %57 : vector<2x8x8xf32> to vector<16x8xf32>
    %c0_27 = arith.constant 0 : index
    %c0_28 = arith.constant 0 : index
    %c0_29 = arith.constant 0 : index
    %59 = vector.load %arg5[%c0_27, %c0_28, %c0_29] : memref<4x8x32xf32, #tpu.memory_space<vmem>>, vector<1x8x32xf32>
    %60 = vector.shape_cast %59 : vector<1x8x32xf32> to vector<8x32xf32>
    %cst_30 = arith.constant dense<0.000000e+00> : vector<16x32xf32>
    %61 = tpu.matmul %58, %60, %cst_30 {dimension_numbers = #tpu.dot_dimension_numbers<[1], [0], [0], [1], [0, 0, 1, 1], [], []>} : vector<16x8xf32>, vector<8x32xf32>, vector<16x32xf32> -> vector<16x32xf32>
    %62 = arith.addf %53, %61 : vector<16x32xf32>
    %63 = vector.extract_strided_slice %12 {offsets = [0, 0, 8], sizes = [2, 8, 8], strides = [1, 1, 1]} : vector<2x8x32xf32> to vector<2x8x8xf32>
    %64 = vector.extract_strided_slice %47 {offsets = [0, 1, 0, 0], sizes = [2, 1, 8, 8], strides = [1, 1, 1, 1]} : vector<2x4x8x8xf32> to vector<2x1x8x8xf32>
    %65 = vector.shape_cast %64 : vector<2x1x8x8xf32> to vector<2x8x8xf32>
    "tpu.trace_start"() <{level = 10 : i32, message = "blm,bmk->blk"}> : () -> ()
    %cst_31 = arith.constant dense<0.000000e+00> : vector<2x8x8xf32>
    %66 = tpu.matmul %65, %63, %cst_31 {dimension_numbers = #tpu.dot_dimension_numbers<[2], [1], [1], [2], [0, 0, 0, 1, 1, 2], [0], [0]>} : vector<2x8x8xf32>, vector<2x8x8xf32>, vector<2x8x8xf32> -> vector<2x8x8xf32>
    "tpu.trace_stop"() : () -> ()
    %67 = vector.shape_cast %66 : vector<2x8x8xf32> to vector<16x8xf32>
    %c1 = arith.constant 1 : index
    %c0_32 = arith.constant 0 : index
    %c0_33 = arith.constant 0 : index
    %68 = vector.load %arg5[%c1, %c0_32, %c0_33] : memref<4x8x32xf32, #tpu.memory_space<vmem>>, vector<1x8x32xf32>
    %69 = vector.shape_cast %68 : vector<1x8x32xf32> to vector<8x32xf32>
    %cst_34 = arith.constant dense<0.000000e+00> : vector<16x32xf32>
    %70 = tpu.matmul %67, %69, %cst_34 {dimension_numbers = #tpu.dot_dimension_numbers<[1], [0], [0], [1], [0, 0, 1, 1], [], []>} : vector<16x8xf32>, vector<8x32xf32>, vector<16x32xf32> -> vector<16x32xf32>
    %71 = arith.addf %62, %70 : vector<16x32xf32>
    %72 = vector.extract_strided_slice %12 {offsets = [0, 0, 16], sizes = [2, 8, 8], strides = [1, 1, 1]} : vector<2x8x32xf32> to vector<2x8x8xf32>
    %73 = vector.extract_strided_slice %47 {offsets = [0, 2, 0, 0], sizes = [2, 1, 8, 8], strides = [1, 1, 1, 1]} : vector<2x4x8x8xf32> to vector<2x1x8x8xf32>
    %74 = vector.shape_cast %73 : vector<2x1x8x8xf32> to vector<2x8x8xf32>
    "tpu.trace_start"() <{level = 10 : i32, message = "blm,bmk->blk"}> : () -> ()
    %cst_35 = arith.constant dense<0.000000e+00> : vector<2x8x8xf32>
    %75 = tpu.matmul %74, %72, %cst_35 {dimension_numbers = #tpu.dot_dimension_numbers<[2], [1], [1], [2], [0, 0, 0, 1, 1, 2], [0], [0]>} : vector<2x8x8xf32>, vector<2x8x8xf32>, vector<2x8x8xf32> -> vector<2x8x8xf32>
    "tpu.trace_stop"() : () -> ()
    %76 = vector.shape_cast %75 : vector<2x8x8xf32> to vector<16x8xf32>
    %c2 = arith.constant 2 : index
    %c0_36 = arith.constant 0 : index
    %c0_37 = arith.constant 0 : index
    %77 = vector.load %arg5[%c2, %c0_36, %c0_37] : memref<4x8x32xf32, #tpu.memory_space<vmem>>, vector<1x8x32xf32>
    %78 = vector.shape_cast %77 : vector<1x8x32xf32> to vector<8x32xf32>
    %cst_38 = arith.constant dense<0.000000e+00> : vector<16x32xf32>
    %79 = tpu.matmul %76, %78, %cst_38 {dimension_numbers = #tpu.dot_dimension_numbers<[1], [0], [0], [1], [0, 0, 1, 1], [], []>} : vector<16x8xf32>, vector<8x32xf32>, vector<16x32xf32> -> vector<16x32xf32>
    %80 = arith.addf %71, %79 : vector<16x32xf32>
    %81 = vector.extract_strided_slice %12 {offsets = [0, 0, 24], sizes = [2, 8, 8], strides = [1, 1, 1]} : vector<2x8x32xf32> to vector<2x8x8xf32>
    %82 = vector.extract_strided_slice %47 {offsets = [0, 3, 0, 0], sizes = [2, 1, 8, 8], strides = [1, 1, 1, 1]} : vector<2x4x8x8xf32> to vector<2x1x8x8xf32>
    %83 = vector.shape_cast %82 : vector<2x1x8x8xf32> to vector<2x8x8xf32>
    "tpu.trace_start"() <{level = 10 : i32, message = "blm,bmk->blk"}> : () -> ()
    %cst_39 = arith.constant dense<0.000000e+00> : vector<2x8x8xf32>
    %84 = tpu.matmul %83, %81, %cst_39 {dimension_numbers = #tpu.dot_dimension_numbers<[2], [1], [1], [2], [0, 0, 0, 1, 1, 2], [0], [0]>} : vector<2x8x8xf32>, vector<2x8x8xf32>, vector<2x8x8xf32> -> vector<2x8x8xf32>
    "tpu.trace_stop"() : () -> ()
    %85 = vector.shape_cast %84 : vector<2x8x8xf32> to vector<16x8xf32>
    %c3 = arith.constant 3 : index
    %c0_40 = arith.constant 0 : index
    %c0_41 = arith.constant 0 : index
    %86 = vector.load %arg5[%c3, %c0_40, %c0_41] : memref<4x8x32xf32, #tpu.memory_space<vmem>>, vector<1x8x32xf32>
    %87 = vector.shape_cast %86 : vector<1x8x32xf32> to vector<8x32xf32>
    %cst_42 = arith.constant dense<0.000000e+00> : vector<16x32xf32>
    %88 = tpu.matmul %85, %87, %cst_42 {dimension_numbers = #tpu.dot_dimension_numbers<[1], [0], [0], [1], [0, 0, 1, 1], [], []>} : vector<16x8xf32>, vector<8x32xf32>, vector<16x32xf32> -> vector<16x32xf32>
    %89 = arith.addf %80, %88 : vector<16x32xf32>
    %cst_43 = arith.constant dense<0.000000e+00> : vector<16xf32>
    %90 = vector.multi_reduction <add>, %89, %cst_43 [1] : vector<16x32xf32> to vector<16xf32>
    %91 = vector.shape_cast %90 : vector<16xf32> to vector<16x1xf32>
    %cst_44 = arith.constant 3.200000e+01 : f32
    %92 = vector.broadcast %cst_44 : f32 to vector<16x1xf32>
    %93 = arith.divf %91, %92 : vector<16x1xf32>
    %94 = vector.broadcast %93 : vector<16x1xf32> to vector<16x32xf32>
    %95 = arith.subf %89, %94 : vector<16x32xf32>
    %96 = arith.mulf %95, %95 : vector<16x32xf32>
    %cst_45 = arith.constant dense<0.000000e+00> : vector<16xf32>
    %97 = vector.multi_reduction <add>, %96, %cst_45 [1] : vector<16x32xf32> to vector<16xf32>
    %98 = vector.shape_cast %97 : vector<16xf32> to vector<16x1xf32>
    %cst_46 = arith.constant 3.200000e+01 : f32
    %99 = vector.broadcast %cst_46 : f32 to vector<16x1xf32>
    %100 = arith.divf %98, %99 : vector<16x1xf32>
    %101 = vector.broadcast %93 : vector<16x1xf32> to vector<16x32xf32>
    %102 = arith.subf %89, %101 : vector<16x32xf32>
    %cst_47 = arith.constant 9.99999974E-6 : f32
    %103 = vector.broadcast %cst_47 : f32 to vector<16x1xf32>
    %104 = arith.addf %100, %103 : vector<16x1xf32>
    %105 = math.rsqrt %104 : vector<16x1xf32>
    %106 = vector.broadcast %105 : vector<16x1xf32> to vector<16x32xf32>
    %107 = arith.mulf %102, %106 : vector<16x32xf32>
    %c0_48 = arith.constant 0 : index
    %c0_49 = arith.constant 0 : index
    %108 = vector.load %arg8[%c0_48, %c0_49] : memref<1x32xf32, #tpu.memory_space<vmem>>, vector<1x32xf32>
    %109 = vector.broadcast %108 : vector<1x32xf32> to vector<16x32xf32>
    %110 = arith.mulf %107, %109 : vector<16x32xf32>
    %c0_50 = arith.constant 0 : index
    %c0_51 = arith.constant 0 : index
    %111 = vector.load %arg9[%c0_50, %c0_51] : memref<1x32xf32, #tpu.memory_space<vmem>>, vector<1x32xf32>
    %112 = vector.broadcast %111 : vector<1x32xf32> to vector<16x32xf32>
    %113 = arith.addf %110, %112 : vector<16x32xf32>
    %114 = vector.shape_cast %113 : vector<16x32xf32> to vector<2x8x32xf32>
    %c0_52 = arith.constant 0 : index
    %c0_53 = arith.constant 0 : index
    %c0_54 = arith.constant 0 : index
    %115 = vector.load %arg10[%c0_52, %c0_53, %c0_54] : memref<2x8x32xf32, #tpu.memory_space<vmem>>, vector<2x8x32xf32>
    tpu.vector_store %arg10[%c0_52, %c0_53, %c0_54], %114 {strides = array<i32>} : memref<2x8x32xf32, #tpu.memory_space<vmem>>, vector<2x8x32xf32>,
    return
  }
  func.func @transform_0(%arg0: i32) -> (i32, i32, i32) {
    %c0_i32 = arith.constant 0 : i32
    %c0_i32_0 = arith.constant 0 : i32
    %c0_i32_1 = arith.constant 0 : i32
    return %arg0, %c0_i32, %c0_i32_0 : i32, i32, i32
  }
  func.func @transform_1(%arg0: i32) -> (i32, i32, i32) {
    %c0_i32 = arith.constant 0 : i32
    %c0_i32_0 = arith.constant 0 : i32
    %c0_i32_1 = arith.constant 0 : i32
    return %arg0, %c0_i32, %c0_i32_0 : i32, i32, i32
  }
  func.func @transform_2(%arg0: i32) -> (i32, i32) {
    %c0_i32 = arith.constant 0 : i32
    %c0_i32_0 = arith.constant 0 : i32
    %c0_i32_1 = arith.constant 0 : i32
    return %c0_i32, %c0_i32_0 : i32, i32
  }
  func.func @transform_3(%arg0: i32) -> (i32, i32) {
    %c0_i32 = arith.constant 0 : i32
    %c0_i32_0 = arith.constant 0 : i32
    %c0_i32_1 = arith.constant 0 : i32
    return %c0_i32, %c0_i32_0 : i32, i32
  }
  func.func @transform_4(%arg0: i32) -> (i32, i32, i32) {
    %c0_i32 = arith.constant 0 : i32
    %c0_i32_0 = arith.constant 0 : i32
    %c0_i32_1 = arith.constant 0 : i32
    %c0_i32_2 = arith.constant 0 : i32
    return %c0_i32, %c0_i32_0, %c0_i32_1 : i32, i32, i32
  }
  func.func @transform_5(%arg0: i32) -> (i32, i32) {
    %c0_i32 = arith.constant 0 : i32
    %c0_i32_0 = arith.constant 0 : i32
    %c0_i32_1 = arith.constant 0 : i32
    return %c0_i32, %c0_i32_0 : i32, i32
  }
  func.func @transform_6(%arg0: i32) -> (i32, i32) {
    %c0_i32 = arith.constant 0 : i32
    %c0_i32_0 = arith.constant 0 : i32
    %c0_i32_1 = arith.constant 0 : i32
    return %c0_i32, %c0_i32_0 : i32, i32
  }
  func.func @transform_7(%arg0: i32) -> (i32, i32) {
    %c0_i32 = arith.constant 0 : i32
    %c0_i32_0 = arith.constant 0 : i32
    %c0_i32_1 = arith.constant 0 : i32
    return %c0_i32, %c0_i32_0 : i32, i32
  }
  func.func @transform_8(%arg0: i32) -> (i32, i32) {
    %c0_i32 = arith.constant 0 : i32
    %c0_i32_0 = arith.constant 0 : i32
    %c0_i32_1 = arith.constant 0 : i32
    return %c0_i32, %c0_i32_0 : i32, i32
  }
  func.func @transform_9(%arg0: i32) -> (i32, i32, i32) {
    %c0_i32 = arith.constant 0 : i32
    %c0_i32_0 = arith.constant 0 : i32
    %c0_i32_1 = arith.constant 0 : i32
    return %arg0, %c0_i32, %c0_i32_0 : i32, i32, i32
  }
  func.func @transform_10(%arg0: i32) -> (i32, i32, i32, i32) {
    %c0_i32 = arith.constant 0 : i32
    %c0_i32_0 = arith.constant 0 : i32
    %c0_i32_1 = arith.constant 0 : i32
    %c0_i32_2 = arith.constant 0 : i32
    return %arg0, %c0_i32, %c0_i32_0, %c0_i32_1 : i32, i32, i32, i32
  }
}

</mosaic_0001>

<bundles_post_ra>
// kernel: tpu_custom_call.1
= control target key start
LH: loop header
LB: loop body
LE: loop exit
PB: predicated region body
PF: predicated region fallthrough
CT: control target
= control target key end

     0   :  { %s3812_s0 = inlined_call_operand.hbm [shape: f32[4,8,16], index: 0, kind: input, shape index: {}]   ;;  %s3813_s1 = inlined_call_operand.hbm [shape: f32[4,1,8], index: 1, kind: input, shape index: {}]   ;;  %s3814_s2 = inlined_call_operand.hbm [shape: f32[16,96], index: 2, kind: input, shape index: {}]   ;;  %s3815_s3 = inlined_call_operand.vmem [shape: f32[1,96], index: 3, kind: input, shape index: {}]   ;;  %s3816_s4 = inlined_call_operand.hbm [shape: f32[4,8,32], index: 4, kind: input, shape index: {}]   ;;  %s3817_s5 = inlined_call_operand.vmem [shape: f32[1,32], index: 5, kind: input, shape index: {}]   ;;  %s3818_s6 = inlined_call_operand.vmem [shape: f32[16,32], index: 6, kind: input, shape index: {}]   ;;  %s3819_s7 = inlined_call_operand.vmem [shape: f32[1,32], index: 7, kind: input, shape index: {}]   ;;  %s3820_s8 = inlined_call_operand.vmem [shape: f32[1,32], index: 8, kind: input, shape index: {}]   ;;  %s3821_s9 = inlined_call_operand.hbm [shape: f32[4,8,32], index: 9, kind: output, shape index: {0}]   ;;  %s3822_s10 = inlined_call_operand.hbm [shape: f32[4,4,8,8], index: 10, kind: output, shape index: {1}]  }
   0x1   :  { %3833 = sst [smem:[#allocation24_spill]] %s3812_s0 }
   0x2   :  { %3834 = sst [smem:[#allocation25_spill]] %s3814_s2 }
   0x3   :  { %3835 = sst [smem:[#allocation26_spill]] %s3816_s4 }
   0x4   :  { %16 = vsyncpa [#allocation3], 0 }
   0x5   :  { %18 = vsyncpa [#allocation3 + $0x1], 0 }
   0x6   :  { %19 = vsyncpa [#allocation6], 0 }
   0x7   :  { %21 = vsyncpa [#allocation6 + $0x1], 0 }
   0x8   :  { %22 = vsyncpa [#allocation9], 0 }
   0x9   :  { %23 = vsyncpa [#allocation4], 0 }
   0xa   :  { %25 = vsyncpa [#allocation4 + $0x1], 0 }
   0xb   :  { %26 = vsyncpa [#allocation12], 0 }
   0xc   :  { %28 = vsyncpa [#allocation12 + $0x1], 0  ;;  %s3258_s13 = smov 0   ;;  %s3260_s14 = smov 0  }
   0xd   :  { %s3262_s15 = smov 0   ;;  %s3264_s16 = smov 0  }
   0xe LB: > { %3836 = sst [smem:[#allocation19_spill]] %s3163_s13  ;;  %s3279_s17 = sadd.s32 4294967295, %s3175_s16   ;;  %s3175_s16 = sphi %s3264_s16, %s3864_s16   ;;  %s3171_s15 = sphi %s3262_s15, %s3866_s15   ;;  %s3167_s14 = sphi %s3260_s14, %s3868_s14   ;;  %s3163_s13 = sphi %s3258_s13, %s3867_s13  }
   0xf   : > { %3837 = sst [smem:[#allocation20_spill]] %s3171_s15  ;;  %s2560_s18 = sadd.s32 4294967294, %s3175_s16  }
  0x10   : > { %p54_p0 = scmp.ne.s32.totalorder %s3167_s14, %s3163_s13  ;;  %p3823_p1 = scmp.eq.s32.totalorder %s3279_s17, 0 }
  0x11   : > { %p257_p3 = scmp.eq.s32.totalorder %s2560_s18, 1  ;;  %p2561_p5 = scmp.ge.s32.totalorder %s3175_s16, 1 }
  0x12   : > { %p3288_p4 = por %p3823_p1, %p54_p0  ;;  %p290_p7 = scmp.lt.s32.totalorder %s3175_s16, 3 }
  0x13   : > { %p3293_p6 = por %p257_p3, %p54_p0  ;;  %s3177_s22 = smov [#allocation7]  }
  0x14   : > { %s3838_s19 = scalar_select %p3288_p4, 1, 0 }
  0x15   : > { %s3839_s20 = scalar_select %p3293_p6, 1, 0 }
  0x16   : > { %p3298_p8 = pnand %p2561_p5, %p290_p7  ;;  %s302_s23 = sshll.u32 %s3177_s22, 4  ;;  %s3302_s23 = int_to_ptr.vmem [resolvable:$true] %s302_s23 }
  0x17   : > { %3840 = sst [smem:[#allocation21_spill]] %s3839_s20  ;;  %s3178_s25 = smov [#allocation8]  }
  0x18   : > { %p2832_p9 = pneg %p3298_p8  ;;  %s318_s26 = sshll.u32 %s3178_s25, 4  ;;  %s3313_s26 = int_to_ptr.vmem [resolvable:$true] %s318_s26 }
  0x19   : > { %s3843_s2 = sld [smem:[#allocation25_spill]] }
  0x1a   : > { %p3309_p11 = pnand %p2832_p9, %p3823_p1 }
  0x1c   : > { %p2951_p13 = pneg %p3309_p11 }
  0x1f   : > { %s2949_s29 = scalar_lea.hbm %s3843_s2, 256 }
  0x20   : > { %p2950_p12 = scmp.ne.s32.totalorder %s3843_s2, %s2949_s29  ;;  %p2956_p5 = scmp.lt.u32.totalorder %s2949_s29, %s3843_s2 }
  0x22   : > { %p2952_p0 = pnand %p2951_p13, %p2950_p12 }
  0x24   : > { %p2953_p3 = pneg %p2952_p0 }
  0x26   : > { %p2958_p7 = pnand %p2956_p5, %p2953_p3 }
  0x28   : > { %2961 = shalt.err (!%p2958_p7)
}
  0x29   : > { %s2962_s22 = scalar_lea.vmem %s3302_s23, 256  ;;  %p2970_p2 = scmp.lt.s32.totalorder %s3302_s23, %s3302_s23 }
  0x2a   : > { %p2963_p9 = scmp.ne.s32.totalorder %s3302_s23, %s2962_s22  ;;  %p2971_p12 = scmp.lt.s32.totalorder %s2962_s22, %s2962_s22 }
  0x2c   : > { %p2965_p10 = pnand %p2963_p9, %p2951_p13  ;;  %p2972_p0 = por %p2971_p12, %p2970_p2 }
  0x2e   : > { %p2966_p1 = pneg %p2965_p10 }
  0x30   : > { %p2973_p6 = pnand %p2972_p0, %p2966_p1 }
  0x32   : > { %2976 = shalt.err (!%p2973_p6)
}
  0x33   : > { %s3826_s25 = smov 128   ;;  %s3827_s27 = smov 8  }
  0x34   : > { %2835 = dma.hbm_to_vmem [thread:$0]  (!%p3309_p11), %s3843_s2, 256, %s3302_s23, [#allocation6], %s3826_s25, %s3826_s25, %s3827_s27  }
  0x35   : > { %s3844_s4 = sld [smem:[#allocation26_spill]] }
  0x3b   : > { %s2977_s12 = scalar_lea.hbm %s3844_s4, 512 }
  0x3c   : > { %p2978_p1 = scmp.ne.s32.totalorder %s3844_s4, %s2977_s12  ;;  %p2984_p10 = scmp.lt.u32.totalorder %s2977_s12, %s3844_s4 }
  0x3e   : > { %p2980_p2 = pnand %p2978_p1, %p2951_p13 }
  0x40   : > { %p2981_p6 = pneg %p2980_p2 }
  0x42   : > { %p2986_p3 = pnand %p2984_p10, %p2981_p6 }
  0x44   : > { %2989 = shalt.err (!%p2986_p3)
}
  0x45   : > { %s2990_s23 = scalar_lea.vmem %s3313_s26, 512  ;;  %p2998_p12 = scmp.lt.s32.totalorder %s3313_s26, %s3313_s26 }
  0x46   : > { %p2991_p5 = scmp.ne.s32.totalorder %s3313_s26, %s2990_s23  ;;  %p2999_p0 = scmp.lt.s32.totalorder %s2990_s23, %s2990_s23 }
  0x48   : > { %p2993_p7 = pnand %p2991_p5, %p2951_p13  ;;  %p3000_p1 = por %p2999_p0, %p2998_p12 }
  0x4a   : > { %p2994_p9 = pneg %p2993_p7 }
  0x4c   : > { %p3001_p2 = pnand %p3000_p1, %p2994_p9 }
  0x4e   : > { %3004 = shalt.err (!%p3001_p2)
}
  0x4f   : > { %2838 = dma.hbm_to_vmem [thread:$0]  (!%p3309_p11), %s3844_s4, 512, %s3313_s26, [#allocation9], %s3826_s25, %s3826_s25, %s3827_s27  }
  0x50   : > { %s3374_s24 = sadd.s32 1, %s3175_s16   ;;  %s41_s28 = sadd.s32 1, %s3171_s15 }
  0x51   : > { %3845 = sst [smem:[#allocation22_spill]] %s3374_s24  ;;  %s38_s29 = ssub.s32 %s3175_s16, %s3374_s24 }
  0x52   : > { %p48_p13 = scmp.ne.s32.totalorder %s3171_s15, %s3167_s14  ;;  %p39_p6 = scmp.eq.s32.totalorder %s38_s29, 0 }
  0x53   : > { %p49_p10 = scmp.eq.s32.totalorder %s3175_s16, 0  ;;  %p3846_p3 = scmp.eq.s32.totalorder %s3279_s17, 1 }
  0x54   : > { %p2855_p7 = scmp.lt.s32.totalorder %s3175_s16, 2  ;;  %s3393_s12 = sand.u32 1, %s3171_s15  }
  0x55   : > { %p3384_p5 = por %p3846_p3, %p48_p13  ;;  %p50_p9 = por %p49_p10, %p48_p13 }
  0x56   : > { %s3390_s11 = scalar_select %p39_p6, %s3171_s15, %s41_s28  }
  0x57   : > { %s3847_s30 = scalar_select %p3384_p5, 1, 0 }
  0x58   : > { %3848 = sst [smem:[#allocation23_spill]] %s3390_s11  ;;  %s2565_s26 = sshll.u32 %s3393_s12, 4 }
  0x59   : > { %s2627_s18 = sshll.u32 %s3175_s16, 8  ;;  %s3849_s0 = sld [smem:[#allocation24_spill]] }
  0x5a   : > { %s348_s20 = scalar_lea.vmem [#allocation2], %s2565_s26  ;;  %p3404_p11 = pnand %p2855_p7, %p50_p9 }
  0x5b   : > { %s355_s28 = sshll.u32 %s348_s20, 4  ;;  %s2568_s27 = sshll.u32 %s3393_s12, 1  ;;  %s3402_s28 = int_to_ptr.vmem [resolvable:$true] %s355_s28 }
  0x5c   : > { %s345_s2 = scalar_lea.sflag [#allocation3], %s3393_s12  ;;  %p3007_p0 = pneg %p3404_p11 }
  0x5f   : > { %s3400_s13 = scalar_lea.hbm %s3849_s0, %s2627_s18  ;;  %s3010_s23 = scalar_lea.hbm %s3849_s0, 512 }
  0x60   : > { %s3005_s22 = scalar_lea.hbm %s3400_s13, 256  ;;  %p3011_p13 = scmp.lt.u32.totalorder %s3400_s13, %s3849_s0 }
  0x61   : > { %p3006_p12 = scmp.ne.s32.totalorder %s3400_s13, %s3005_s22  ;;  %p3012_p6 = scmp.lt.u32.totalorder %s3010_s23, %s3005_s22 }
  0x62   : > { %p3014_p3 = scmp.lt.u32.totalorder %s3005_s22, %s3400_s13 }
  0x63   : > { %p3008_p1 = pnand %p3007_p0, %p3006_p12  ;;  %p3013_p10 = por %p3012_p6, %p3011_p13 }
  0x65   : > { %p3009_p2 = pneg %p3008_p1  ;;  %p3015_p7 = por %p3014_p3, %p3013_p10 }
  0x67   : > { %p3016_p9 = pnand %p3015_p7, %p3009_p2 }
  0x69   : > { %3019 = shalt.err (!%p3016_p9)
}
  0x6a   : > { %s3020_s25 = scalar_lea.vmem %s3402_s28, 256  ;;  %s3181_s26 = smov [#allocation2]  }
  0x6b   : > { %p3021_p12 = scmp.ne.s32.totalorder %s3402_s28, %s3020_s25  ;;  %s3025_s18 = sshll.u32 %s3181_s26, 4  ;;  %s3026_s18 = int_to_ptr.vmem [resolvable:$false] %s3025_s18 }
  0x6c   : > { %s3027_s4 = scalar_lea.vmem %s3026_s18, 512  ;;  %p3028_p4 = scmp.lt.s32.totalorder %s3402_s28, %s3026_s18 }
  0x6d   : > { %p3023_p1 = pnand %p3021_p12, %p3007_p0  ;;  %p3029_p13 = scmp.lt.s32.totalorder %s3027_s4, %s3020_s25 }
  0x6f   : > { %p3024_p5 = pneg %p3023_p1  ;;  %p3030_p6 = por %p3029_p13, %p3028_p4 }
  0x71   : > { %p3031_p10 = pnand %p3030_p6, %p3024_p5 }
  0x73   : > { %3034 = shalt.err (!%p3031_p10)
}
  0x74   : > { %s3851_s22 = smov 8   ;;  %s3852_s23 = smov 128  }
  0x75   : > { %2842 = dma.hbm_to_vmem [thread:$0]  (!%p3404_p11), %s3400_s13, 256, %s3402_s28, %s345_s2, %s3852_s23, %s3852_s23, %s3851_s22  }
  0x76   : > { %s2628_s20 = sshll.u32 %s3175_s16, 5  ;;  %s369_s4 = scalar_lea.vmem [#allocation5], %s2568_s27 }
  0x77   : > { %s3445_s18 = scalar_lea.hbm %s3813_s1, %s2628_s20  ;;  %s376_s0 = sshll.u32 %s369_s4, 4  ;;  %s3449_s0 = int_to_ptr.vmem [resolvable:$true] %s376_s0 }
  0x78   : > { %s3853_s11 = sand.u32 1, %s3175_s16   ;;  %s3035_s24 = scalar_lea.hbm %s3445_s18, 32 }
  0x79   : > { %s3453_s15 = scalar_lea.sflag [#allocation6], %s3853_s11  ;;  %p3036_p4 = scmp.ne.s32.totalorder %s3445_s18, %s3035_s24 }
  0x7a   : > { %s3040_s12 = scalar_lea.hbm %s3813_s1, 64  ;;  %p3041_p3 = scmp.lt.u32.totalorder %s3445_s18, %s3813_s1 }
  0x7b   : > { %p3038_p5 = pnand %p3036_p4, %p3007_p0  ;;  %p3042_p7 = scmp.lt.u32.totalorder %s3040_s12, %s3035_s24 }
  0x7c   : > { %p3044_p12 = scmp.lt.u32.totalorder %s3035_s24, %s3445_s18 }
  0x7d   : > { %p3039_p2 = pneg %p3038_p5  ;;  %p3043_p9 = por %p3042_p7, %p3041_p3 }
  0x7f   : > { %p3045_p1 = por %p3044_p12, %p3043_p9 }
  0x81   : > { %p3046_p13 = pnand %p3045_p1, %p3039_p2 }
  0x83   : > { %3049 = shalt.err (!%p3046_p13)
}
  0x84   : > { %s3050_s27 = scalar_lea.vmem %s3449_s0, 32  ;;  %s3182_s11 = smov [#allocation5]  }
  0x85   : > { %p3051_p6 = scmp.ne.s32.totalorder %s3449_s0, %s3050_s27  ;;  %s3055_s23 = sshll.u32 %s3182_s11, 4  ;;  %s3056_s23 = int_to_ptr.vmem [resolvable:$false] %s3055_s23 }
  0x86   : > { %s3057_s20 = scalar_lea.vmem %s3056_s23, 64  ;;  %p3058_p5 = scmp.lt.s32.totalorder %s3449_s0, %s3056_s23 }
  0x87   : > { %p3053_p10 = pnand %p3051_p6, %p3007_p0  ;;  %p3059_p3 = scmp.lt.s32.totalorder %s3057_s20, %s3050_s27 }
  0x89   : > { %p3054_p4 = pneg %p3053_p10  ;;  %p3060_p7 = por %p3059_p3, %p3058_p5 }
  0x8b   : > { %p3061_p9 = pnand %p3060_p7, %p3054_p4 }
  0x8d   : > { %3064 = shalt.err (!%p3061_p9)
}
  0x8e   : > { %s3183_s24 = smov 16   ;;  %s3184_s26 = smov 1  }
  0x8f   : > { %2845 = dma.hbm_to_vmem [thread:$0]  (!%p3404_p11), %s3445_s18, 32, %s3449_s0, %s3453_s15, %s3183_s24, %s3183_s24, %s3184_s26  }
  0x90   : > { %388 = sbr.rel (%p3298_p8) target bundleno = 2067 (0x813), region = 56  ;;  %s3482_s25 = sand.u32 (!%p3298_p8), 1, %s3167_s14  }
  0x91   : > { %s2572_s4 = sshll.u32 (!%p3298_p8), %s3482_s25, 4  ;;  %s391_s2 = scalar_lea.sflag (!%p3298_p8), [#allocation3], %s3482_s25 }
  0x92   : > { %s394_s13 = scalar_lea.vmem (!%p3298_p8), [#allocation2], %s2572_s4  ;;  %p3854_p0 = scmp.ne.s32.totalorder (!%p3298_p8), %s3838_s19, 0 }
  0x97   : > { %3138 = dma.done.wait (%p3854_p0), %s391_s2, 256  }
  0x98   : > { %3140 = vsyncadd (%p3854_p0), %s391_s2, 4294967040  ;;  %s399_s0 = sand.u32 1, %s3279_s17   ;;  %s2573_s15 = sshll.u32 %s3482_s25, 1 }
  0x99   : > { %s400_s21 = scalar_lea.sflag [#allocation6], %s399_s0  ;;  %s3494_s29 = scalar_lea.vmem [#allocation5], %s2573_s15 }
  0x9a   : > { %3142 = dma.done.wait (%p3854_p0), %s400_s21, 32  }
  0x9b   : > { %3144 = vsyncadd (%p3854_p0), %s400_s21, 4294967264  ;;  %p3855_p8 = scmp.eq.s32.totalorder %s3279_s17, 0 }
  0x9d   : > { %3146 = dma.done.wait (%p3855_p8), [#allocation6], 256   ;;  %p3856_p11 = pmov %p3855_p8 }
  0x9e   : > { %p3857_p2 = pmov %p3855_p8 }
  0x9f   : > { %3148 = vsyncadd (%p3856_p11), [#allocation6], 4294967040 }
  0xa0   : > { %3150 = dma.done.wait (%p3857_p2), [#allocation9], 512   ;;  %p3858_p12 = pmov %p3857_p2 }
  0xa1   : > { %vm473_vm0 = vcmask 130048   ;;  %v464_v0 = vld [vmem:[#allocation7] sm:$0xff]  ;;  %v465_v1 = vld [vmem:[#allocation7 + $0x8] sm:$0xff]  ;;  %v3185_v5 = vmov 0.0   ;;  %vm3186_vm1 = vmmov 0   ;;  %s3187_s12 = smov 88   ;;  %v1184_v25 = vlaneseq }
  0xa2   : > { %3152 = vsyncadd (%p3858_p12), [#allocation9], 4294966784  ;;  %v3508_v2 = vld [vmem:[%s394_s13] sm:$0xff]  ;;  %v2798_v3 = vpack.c.bf16 %v465_v1, %v464_v0  ;;  %v3512_v4 = vld [vmem:[%s394_s13 + $0x8] sm:$0xff]  ;;  %2691 = vmatprep.subr.mxu1 %v3185_v5  ;;  %2693 = vmatprep.mubr.msk.f32.mxu1 %vm3186_vm1, %v3185_v5  ;;  %s3188_s28 = smov 96   ;;  %s3189_s22 = smov 120  }
  0xa3   : > { %2688 = vmatprep.mubr.msk.f32.mxu0 %vm473_vm0, %v3508_v2  ;;  %v2578_v6 = vld [vmem:[%s3815_s3] ss:$0 sm:$0xff]  ;;  %s3190_s27 = smov 80   ;;  %s3191_s11 = smov 112   ;;  %vm562_vm2 = vcmask 64512   ;;  %v1185_v27 = vshrl.u32 %v1184_v25, 7 }
  0xa4   : > { %2799 = vmatprep.subr.bf16.mxu0 %v2798_v3  ;;  %s3192_s23 = smov 104   ;;  %s3193_s20 = smov 72   ;;  %v555_v26 = vld [vmem:[%s3494_s29] sm:$0x1]  ;;  %v556_v28 = vld [vmem:[%s3494_s29 + $0x1] sm:$0x1] }
  0xa5   : > { %2801 = vmatpush3.bf16.msra.mxu0 %v2798_v3  ;;  %vm557_vm3 = vcmp.eq.f32.partialorder %v555_v26, 0.0  ;;  %v1186_v29 = vsub.s32 0, %v1185_v27  ;;  %v3194_v30 = vmov 0   ;;  %vm558_vm4 = vcmp.eq.f32.partialorder %v556_v28, 0.0  ;;  %s3195_s24 = smov 64   ;;  %s3196_s26 = smov 56  }
  0xa6   : > { %2696 = vmatprep.subr.mxu0 %v3185_v5  ;;  %v1182_v31 = vsel %vm557_vm3, 1, %v3194_v30  ;;  %v1183_v33 = vsel %vm558_vm4, 1, %v3194_v30  ;;  %s3197_s21 = smov 48   ;;  %s2577_s29 = sshll.u32 %s3482_s25, 6  ;;  %vm2329_vm7 = vcmask 261120  }
  0xa7   : > { %v1187_v32 = vrot.slane %v1182_v31, %v1186_v29  ;;  %v1191_v34 = vrot.slane %v1183_v33, %v1186_v29  ;;  %s3643_s19 = scalar_lea.vmem [#allocation11], %s2577_s29  ;;  %s3198_s18 = smov 40  }
  0xa8   : > { %2689 = vmatmul.mubr.msk.f32.vlgmr.msra.gmra.mrb[0].mxu0 %vm473_vm0, %v3512_v4  ;;  %p3859_p13 = scmp.ne.s32.totalorder %s3847_s30, 0  ;;  %s3199_s2 = smov [#allocation11]  }
  0xa9   : > { %2698 = vmatprep.mubr.msk.f32.mxu0 %vm3186_vm1, %v3185_v5  ;;  %vm1192_vm5 = vcmp.eq.s32.totalorder %v1187_v32, 1  ;;  %vm1193_vm6 = vcmp.eq.s32.totalorder %v1191_v34, 1  ;;  %s3069_s13 = sshll.u32 %s3199_s2, 4  ;;  %s3070_s13 = int_to_ptr.vmem [resolvable:$false] %s3069_s13 }
  0xaa   : > { %s3071_s0 = scalar_lea.vmem %s3070_s13, 2048 }
 0x17b   : > { %v2690_v7 = vpop.f32.mrb[0].mxu0 }
 0x17c   : > { %v546_v8 = vpop.f32.mrb[1].mxu0  ;;  %v3529_v10 = vadd.f32 %v2690_v7, %v2578_v6 }
 0x17d   : > { %v3525_v9 = vadd.f32 %v2578_v6, %v546_v8 }
 0x17f   : > { %716 = vrot.lane.b32.xlu1 %v3525_v9, %s3187_s12  ;;  %560 = vrot.lane.b32.xlu0 %v3525_v9, %s3188_s28 }
 0x183   : > { %714 = vrot.lane.b32.xlu1 %v3525_v9, %s3189_s22  ;;  %638 = vrot.lane.b32.xlu0 %v3529_v10, %s3188_s28 }
 0x187   : > { %792 = vrot.lane.b32.xlu1 %v3529_v10, %s3189_s22  ;;  %794 = vrot.lane.b32.xlu0 %v3529_v10, %s3187_s12  ;;  %s2631_s22 = sshll.u32 %s3279_s17, 10 }
 0x18b   : > { %950 = vrot.lane.b32.xlu1 %v3529_v10, %s3190_s27  ;;  %872 = vrot.lane.b32.xlu0 %v3525_v9, %s3190_s27  ;;  %s2413_s27 = sshll.u32 %s3643_s19, 4  ;;  %s3720_s27 = int_to_ptr.vmem [resolvable:$true] %s2413_s27 }
 0x18c   : > { %p3072_p4 = scmp.lt.s32.totalorder %s3720_s27, %s3070_s13 }
 0x18f   : > { %948 = vrot.lane.b32.xlu1 %v3529_v10, %s3191_s11  ;;  %870 = vrot.lane.b32.xlu0 %v3525_v9, %s3191_s11 }
 0x193   : > { %1026 = vrot.lane.b32.xlu1 %v3525_v9, %s3192_s23  ;;  %1028 = vrot.lane.b32.xlu0 %v3525_v9, %s3193_s20 }
 0x197   : > { %1104 = vrot.lane.b32.xlu1 %v3529_v10, %s3192_s23  ;;  %1106 = vrot.lane.b32.xlu0 %v3529_v10, %s3193_s20  ;;  %s3718_s20 = scalar_lea.hbm %s3822_s10, %s2631_s22 }
 0x1f1   : > { %v717_v11 = vpop.permute.xlu1 %716  ;;  %v561_v12 = vpop.permute.xlu0 %560 }
 0x1f2   : > { %2692 = vmatpush3.xpose.msk.msra.mxu1 %vm562_vm2, %v561_v12 }
 0x1f3   : > { %2701 = vmatprep.subr.mxu1 %v3185_v5 }
 0x1f5   : > { %v715_v13 = vpop.permute.xlu1 %714  ;;  %2694 = vmatmul.mubr.msk.f32.vlgmr.msra.gmra.mrb[0].mxu1 %vm562_vm2, %v3525_v9  ;;  %v639_v14 = vpop.permute.xlu0 %638 }
 0x1f6   : > { %2697 = vmatpush3.xpose.msk.msra.mxu0 %vm562_vm2, %v639_v14  ;;  %2702 = vmatpush3.xpose.msk.msra.mxu1 %vm562_vm2, %v717_v11 }
 0x1f7   : > { %2703 = vmatprep.mubr.msk.f32.mxu1 %vm3186_vm1, %v3185_v5  ;;  %2706 = vmatprep.subr.mxu0 %v3185_v5 }
 0x1f8   : > { %2711 = vmatprep.subr.mxu1 %v3185_v5 }
 0x1f9   : > { %v793_v15 = vpop.permute.xlu1 %792  ;;  %2699 = vmatmul.mubr.msk.f32.vlgmr.msra.gmra.mrb[2].mxu0 %vm562_vm2, %v3529_v10  ;;  %2704 = vmatmul.mubr.msk.f32.vlgmr.msra.gmra.mrb[2].mxu1 %vm562_vm2, %v715_v13  ;;  %v795_v16 = vpop.permute.xlu0 %794 }
 0x1fa   : > { %2707 = vmatpush3.xpose.msk.msra.mxu0 %vm562_vm2, %v795_v16  ;;  %2708 = vmatprep.mubr.msk.f32.mxu0 %vm3186_vm1, %v3185_v5 }
 0x1fb   : > { %2716 = vmatprep.subr.mxu0 %v3185_v5  ;;  %2713 = vmatprep.mubr.msk.f32.mxu1 %vm3186_vm1, %v3185_v5 }
 0x1fd   : > { %v951_v17 = vpop.permute.xlu1 %950  ;;  %2709 = vmatmul.mubr.msk.f32.vlgmr.msra.gmra.mrb[4].mxu0 %vm562_vm2, %v793_v15  ;;  %v873_v18 = vpop.permute.xlu0 %872 }
 0x1fe   : > { %2712 = vmatpush3.xpose.msk.msra.mxu1 %vm562_vm2, %v873_v18  ;;  %2717 = vmatpush3.xpose.msk.msra.mxu0 %vm562_vm2, %v951_v17 }
 0x1ff   : > { %2718 = vmatprep.mubr.msk.f32.mxu0 %vm3186_vm1, %v3185_v5  ;;  %2721 = vmatprep.subr.mxu1 %v3185_v5 }
 0x200   : > { %2726 = vmatprep.subr.mxu0 %v3185_v5 }
 0x201   : > { %v949_v19 = vpop.permute.xlu1 %948  ;;  %v871_v20 = vpop.permute.xlu0 %870 }
 0x202   : > { %2714 = vmatmul.mubr.msk.f32.vlgmr.msra.gmra.mrb[4].mxu1 %vm562_vm2, %v871_v20  ;;  %2719 = vmatmul.mubr.msk.f32.vlgmr.msra.gmra.mrb[6].mxu0 %vm562_vm2, %v949_v19  ;;  %v1298_v20 = vld [vmem:[%s3818_s6] sm:$0xff] }
 0x203   : > { %2723 = vmatprep.mubr.msk.f32.mxu1 %vm3186_vm1, %v3185_v5  ;;  %2728 = vmatprep.mubr.msk.f32.mxu0 %vm3186_vm1, %v3185_v5 }
 0x205   : > { %v1029_v21 = vpop.permute.xlu0 %1028  ;;  %v1027_v22 = vpop.permute.xlu1 %1026 }
 0x206   : > { %2722 = vmatpush3.xpose.msk.msra.mxu1 %vm562_vm2, %v1029_v21  ;;  %v1299_v21 = vld [vmem:[%s3818_s6 + $0x8] sm:$0xff] }
 0x209   : > { %2724 = vmatmul.mubr.msk.f32.vlgmr.msra.gmra.mrb[6].mxu1 %vm562_vm2, %v1027_v22  ;;  %v1107_v23 = vpop.permute.xlu0 %1106  ;;  %v1105_v24 = vpop.permute.xlu1 %1104  ;;  %v2802_v22 = vpack.c.bf16 %v1299_v21, %v1298_v20 }
 0x20a   : > { %2727 = vmatpush3.xpose.msk.msra.mxu0 %vm562_vm2, %v1107_v23  ;;  %2735 = vmatprep.mubr.msk.f32.mxu1 %vm473_vm0, %v3508_v2 }
 0x20b   : > { %2738 = vmatprep.subr.mxu0 %v3185_v5  ;;  %2803 = vmatprep.subr.bf16.mxu1 %v2802_v22 }
 0x20c   : > { %2805 = vmatpush3.bf16.msra.mxu1 %v2802_v22 }
 0x20d   : > { %2729 = vmatmul.mubr.msk.f32.vlgmr.msra.gmra.mrb[8].mxu0 %vm562_vm2, %v1105_v24  ;;  %2743 = vmatprep.subr.mxu1 %v3185_v5 }
 0x20e   : > { %2740 = vmatprep.mubr.msk.f32.mxu0 %vm3186_vm1, %v3185_v5 }
 0x20f   : > { %2736 = vmatmul.mubr.msk.f32.vlgmr.msra.gmra.mrb[8].mxu1 %vm473_vm0, %v3512_v4 }
 0x210   : > { %2745 = vmatprep.mubr.msk.f32.mxu1 %vm3186_vm1, %v3185_v5 }
 0x2c8   : > { %v633_v35 = vpop.f32.mrb[0].mxu1 }
 0x2c9   : > { %v1194_v36 = vsel %vm1192_vm5, -1.7014117e+38, %v633_v35  ;;  %v2695_v37 = vpop.f32.mrb[1].mxu1 }
 0x2ca   : > { %v1202_v38 = vsel %vm562_vm2, %v1194_v36, -inf }
 0x2cb   : > { %1203 = vmax.xlane.f32.xlu0 %v1202_v38 }
 0x2cc   : > { %v710_v39 = vpop.f32.mrb[2].mxu0  ;;  %v788_v40 = vpop.f32.mrb[2].mxu1 }
 0x2cd   : > { %v1198_v41 = vsel %vm1193_vm6, -1.7014117e+38, %v710_v39  ;;  %v3590_v42 = vsel %vm1192_vm5, -1.7014117e+38, %v788_v40  ;;  %v2700_v43 = vpop.f32.mrb[3].mxu0  ;;  %v2705_v44 = vpop.f32.mrb[3].mxu1 }
 0x2ce   : > { %v1205_v45 = vsel %vm562_vm2, %v3590_v42, -inf  ;;  %v1214_v46 = vsel %vm562_vm2, %v1198_v41, -inf }
 0x2cf   : > { %1206 = vmax.xlane.f32.xlu0 %v1205_v45  ;;  %1215 = vmax.xlane.f32.xlu1 %v1214_v46 }
 0x2d0   : > { %v866_v47 = vpop.f32.mrb[4].mxu0 }
 0x2d1   : > { %v1199_v48 = vsel %vm1193_vm6, -1.7014117e+38, %v866_v47  ;;  %v2710_v49 = vpop.f32.mrb[5].mxu0 }
 0x2d2   : > { %v1217_v50 = vsel %vm562_vm2, %v1199_v48, -inf }
 0x2d3   : > { %1218 = vmax.xlane.f32.xlu0 %v1217_v50 }
 0x2d5   : > { %v944_v51 = vpop.f32.mrb[4].mxu1  ;;  %v1022_v52 = vpop.f32.mrb[6].mxu0 }
 0x2d6   : > { %v3598_v53 = vsel %vm1192_vm5, -1.7014117e+38, %v944_v51  ;;  %v3601_v54 = vsel %vm1193_vm6, -1.7014117e+38, %v1022_v52  ;;  %v2715_v55 = vpop.f32.mrb[5].mxu1  ;;  %v2720_v56 = vpop.f32.mrb[7].mxu0 }
 0x2d7   : > { %v1208_v27 = vsel %vm562_vm2, %v3598_v53, -inf  ;;  %v1220_v29 = vsel %vm562_vm2, %v3601_v54, -inf  ;;  %v1534_v51 = vld [vmem:[#allocation8] sm:$0xff] }
 0x2dc   : > { %v1100_v57 = vpop.f32.mrb[6].mxu1 }
 0x2dd   : > { %v3604_v58 = vsel %vm1192_vm5, -1.7014117e+38, %v1100_v57  ;;  %v2725_v59 = vpop.f32.mrb[7].mxu1 }
 0x2de   : > { %v1211_v4 = vsel %vm562_vm2, %v3604_v58, -inf }
 0x2e0   : > { %1382 = vrot.lane.b32.xlu1 %v3525_v9, %s3195_s24  ;;  %v1178_v60 = vpop.f32.mrb[8].mxu0 }
 0x2e1   : > { %v3609_v61 = vsel %vm1193_vm6, -1.7014117e+38, %v1178_v60  ;;  %v2730_v62 = vpop.f32.mrb[9].mxu0 }
 0x2e2   : > { %v1223_v28 = vsel %vm562_vm2, %v3609_v61, -inf }
 0x358   : > { %v1204_v63 = vpop.xlane.xlu0 %1203 }
 0x359   : > { %v1226_v0 = vsub.f32 %v1194_v36, %v1204_v63 }
 0x35b   : > { %v1234_v1 = vmul.f32 1.442695, %v1226_v0 }
 0x35c   : > { %v1216_v2 = vpop.xlane.xlu1 %1215  ;;  %v1207_v3 = vpop.xlane.xlu0 %1206 }
 0x35d   : > { %2913 = vpow2.f32 %v1234_v1  ;;  %v1230_v6 = vsub.f32 %v1198_v41, %v1216_v2  ;;  %v1227_v23 = vsub.f32 %v3590_v42, %v1207_v3  ;;  %v1771_v2 = vld [vmem:[#allocation8 + $0x8] sm:$0xff] }
 0x35f   : > { %v1242_v7 = vmul.f32 1.442695, %v1230_v6  ;;  %v1236_v24 = vmul.f32 1.442695, %v1227_v23 }
 0x360   : > { %v1383_v8 = vpop.permute.xlu1 %1382  ;;  %v1219_v11 = vpop.xlane.xlu0 %1218 }
 0x361   : > { %2915 = vpow2.f32 %v1242_v7  ;;  %v1231_v12 = vsub.f32 %v1199_v48, %v1219_v11  ;;  %2739 = vmatpush3.msra.mxu0 %v1383_v8 }
 0x362   : > { %2753 = vmatprep.subr.mxu0 %v3185_v5 }
 0x363   : > { %v1244_v13 = vmul.f32 1.442695, %v1231_v12 }
 0x365   : > { %2917 = vpow2.f32 %v1244_v13 }
 0x366   : > { %2919 = vpow2.f32 %v1236_v24 }
 0x367   : > { %v2914_v14 = vpop.eup %2913 }
 0x368   : > { %v1250_v15 = vsel %vm562_vm2, %v2914_v14, 0.0 }
 0x369   : > { %1251 = vadd.xlane.f32.xlu1 %v1250_v15 }
 0x36b   : > { %v2916_v16 = vpop.eup %2915 }
 0x36c   : > { %v1262_v17 = vsel %vm562_vm2, %v2916_v16, 0.0 }
 0x36d   : > { %1263 = vadd.xlane.f32.xlu0 %v1262_v17 }
 0x36f   : > { %v2918_v18 = vpop.eup %2917 }
 0x370   : > { %v1265_v19 = vsel %vm562_vm2, %v2918_v18, 0.0  ;;  %v2920_v25 = vpop.eup %2919 }
 0x371   : > { %1266 = vadd.xlane.f32.xlu0 %v1265_v19  ;;  %v1253_v26 = vsel %vm562_vm2, %v2920_v25, 0.0 }
 0x37a   : > { %1618 = vrot.lane.b32.xlu1 %v3525_v9, %s3196_s26 }
 0x387   : > { %1458 = vrot.lane.b32.xlu0 %v3529_v10, %s3195_s24  ;;  %s2383_s24 = scalar_lea.sflag [#allocation12], %s3482_s25 }
 0x39e   : > { %1254 = vadd.xlane.f32.xlu1 %v1253_v26 }
 0x3a6   : > { %1209 = vmax.xlane.f32.xlu0 %v1208_v27 }
 0x3aa   : > { %1212 = vmax.xlane.f32.xlu0 %v1211_v4 }
 0x3ae   : > { %1224 = vmax.xlane.f32.xlu0 %v1223_v28  ;;  %v2008_v28 = vld [vmem:[#allocation8 + $0x10] sm:$0xff] }
 0x3af   : > { %1694 = vrot.lane.b32.xlu1 %v3529_v10, %s3196_s26  ;;  %s3065_s26 = scalar_lea.vmem %s3720_s27, 1024 }
 0x3b0   : > { %p3066_p1 = scmp.ne.s32.totalorder %s3720_s27, %s3065_s26  ;;  %p3073_p5 = scmp.lt.s32.totalorder %s3071_s0, %s3065_s26 }
 0x3b2   : > { %p3067_p6 = pnand %p3066_p1, %p3859_p13  ;;  %p3074_p3 = por %p3073_p5, %p3072_p4 }
 0x3b4   : > { %p3068_p10 = pneg %p3067_p6 }
 0x3b6   : > { %p3075_p7 = pnand %p3074_p3, %p3068_p10 }
 0x3d3   : > { %1221 = vmax.xlane.f32.xlu1 %v1220_v29  ;;  %v2245_v29 = vld [vmem:[#allocation8 + $0x18] sm:$0xff] }
 0x3e4   : > { %1855 = vrot.lane.b32.xlu1 %v3525_v9, %s3197_s21 }
 0x3f6   : > { %v1252_v30 = vpop.xlane.xlu1 %1251 }
 0x3f7   : > { %2921 = vrcp.f32 %v1252_v30 }
 0x3fa   : > { %v1264_v31 = vpop.xlane.xlu0 %1263  ;;  %v1619_v36 = vpop.permute.xlu1 %1618 }
 0x3fb   : > { %2923 = vrcp.f32 %v1264_v31 }
 0x3fe   : > { %v1267_v32 = vpop.xlane.xlu0 %1266 }
 0x3ff   : > { %2925 = vrcp.f32 %v1267_v32 }
 0x401   : > { %v2922_v33 = vpop.eup %2921 }
 0x402   : > { %v1282_v34 = vmul.f32 %v2922_v33, %v2914_v14  ;;  %v1459_v35 = vpop.permute.xlu0 %1458 }
 0x403   : > { %2744 = vmatpush3.msra.mxu1 %v1459_v35 }
 0x404   : > { %1290 = vst.msk [vmem:[%s3643_s19] sm:$0xff] %vm562_vm2, %v1282_v34  ;;  %2741 = vmatmul.mubr.msk.f32.vlgmr.msra.gmra.mrb[10].mxu0 %vm562_vm2, %v1282_v34  ;;  %2748 = vmatprep.subr.mxu1 %v1534_v51 }
 0x405   : > { %v2924_v37 = vpop.eup %2923  ;;  %2754 = vmatpush3.msra.mxu0 %v1619_v36  ;;  %2755 = vmatprep.mubr.msk.f32.mxu0 %vm3186_vm1, %v3185_v5 }
 0x406   : > { %v1286_v38 = vmul.f32 %v2924_v37, %v2916_v16  ;;  %2758 = vmatprep.subr.mxu0 %v3185_v5  ;;  %v2597_v37 = vld [vmem:[%s3817_s5] ss:$0 sm:$0xff] }
 0x408   : > { %1294 = vst.msk [vmem:[%s3643_s19 + $0x20] sm:$0xff] %vm562_vm2, %v1286_v38  ;;  %2746 = vmatmul.mubr.msk.f32.vlgmr.msra.gmra.mrb[10].mxu1 %vm562_vm2, %v1286_v38 }
 0x409   : > { %v2926_v39 = vpop.eup %2925  ;;  %2749 = vmatpush3.msra.mxu1 %v1534_v51 }
 0x40a   : > { %v1287_v40 = vmul.f32 %v2926_v39, %v2918_v18  ;;  %2763 = vmatprep.subr.mxu1 %v1771_v2 }
 0x40c   : > { %1295 = vst.msk [vmem:[%s3643_s19 + $0x28] sm:$0xff] %vm562_vm2, %v1287_v40 }
 0x42b   : > { %v1255_v41 = vpop.xlane.xlu1 %1254 }
 0x42c   : > { %2927 = vrcp.f32 %v1255_v41 }
 0x42f   : > { %v1695_v47 = vpop.permute.xlu1 %1694 }
 0x433   : > { %v1210_v42 = vpop.xlane.xlu0 %1209 }
 0x434   : > { %v1228_v43 = vsub.f32 %v3598_v53, %v1210_v42 }
 0x436   : > { %v2928_v44 = vpop.eup %2927  ;;  %v1238_v45 = vmul.f32 1.442695, %v1228_v43 }
 0x437   : > { %v1283_v46 = vmul.f32 %v2928_v44, %v2920_v25  ;;  %v1213_v50 = vpop.xlane.xlu0 %1212 }
 0x438   : > { %2929 = vpow2.f32 %v1238_v45  ;;  %v1229_v57 = vsub.f32 %v3604_v58, %v1213_v50 }
 0x439   : > { %1291 = vst.msk [vmem:[%s3643_s19 + $0x8] sm:$0xff] %vm562_vm2, %v1283_v46  ;;  %2756 = vmatmul.mubr.msk.f32.vlgmr.msra.gmra.mrb[12].mxu0 %vm562_vm2, %v1283_v46 }
 0x43a   : > { %2759 = vmatpush3.msra.mxu0 %v1695_v47  ;;  %2760 = vmatprep.mubr.msk.f32.mxu0 %vm3186_vm1, %v3185_v5 }
 0x43b   : > { %2768 = vmatprep.subr.mxu0 %v3185_v5  ;;  %v1225_v52 = vpop.xlane.xlu0 %1224 }
 0x43c   : > { %v1233_v53 = vsub.f32 %v3609_v61, %v1225_v52 }
 0x43d   : > { %2761 = vmatmul.mubr.msk.f32.vlgmr.msra.gmra.mrb[14].mxu0 %vm562_vm2, %v1287_v40 }
 0x43e   : > { %2770 = vmatprep.mubr.msk.f32.mxu0 %vm3186_vm1, %v3185_v5  ;;  %v1248_v59 = vmul.f32 1.442695, %v1233_v53 }
 0x442   : > { %v2930_v48 = vpop.eup %2929 }
 0x443   : > { %v1256_v49 = vsel %vm562_vm2, %v2930_v48, 0.0 }
 0x444   : > { %1257 = vadd.xlane.f32.xlu1 %v1256_v49 }
 0x455   : > { %2092 = vrot.lane.b32.xlu1 %v3525_v9, %s3198_s18  ;;  %v1240_v9 = vmul.f32 1.442695, %v1229_v57 }
 0x460   : > { %v1222_v55 = vpop.xlane.xlu1 %1221 }
 0x461   : > { %v1232_v56 = vsub.f32 %v3601_v54, %v1222_v55 }
 0x463   : > { %v1246_v60 = vmul.f32 1.442695, %v1232_v56 }
 0x464   : > { %v1856_v62 = vpop.permute.xlu1 %1855 }
 0x465   : > { %2931 = vpow2.f32 %v1246_v60  ;;  %2769 = vmatpush3.msra.mxu0 %v1856_v62 }
 0x466   : > { %2783 = vmatprep.subr.mxu0 %v3185_v5  ;;  %2933 = vpow2.f32 %v1248_v59 }
 0x467   : > { %2935 = vpow2.f32 %v1240_v9 }
 0x46f   : > { %v2932_v63 = vpop.eup %2931 }
 0x470   : > { %v1268_v0 = vsel %vm562_vm2, %v2932_v63, 0.0  ;;  %v2934_v1 = vpop.eup %2933 }
 0x471   : > { %1269 = vadd.xlane.f32.xlu0 %v1268_v0  ;;  %v1271_v61 = vsel %vm562_vm2, %v2934_v1, 0.0  ;;  %v2936_v54 = vpop.eup %2935 }
 0x472   : > { %v1259_v58 = vsel %vm562_vm2, %v2936_v54, 0.0 }
 0x475   : > { %1272 = vadd.xlane.f32.xlu0 %v1271_v61 }
 0x479   : > { %1260 = vadd.xlane.f32.xlu1 %v1259_v58 }
 0x48a   : > { %2168 = vrot.lane.b32.xlu1 %v3529_v10, %s3198_s18 }
 0x48b   : > { %1931 = vrot.lane.b32.xlu0 %v3529_v10, %s3197_s21 }
 0x4d1   : > { %v1258_v3 = vpop.xlane.xlu1 %1257 }
 0x4d2   : > { %2937 = vrcp.f32 %v1258_v3 }
 0x4d5   : > { %v2093_v10 = vpop.permute.xlu1 %2092 }
 0x4d7   : > { %v1454_v6 = vpop.f32.mrb[10].mxu0 }
 0x4d8   : > { %v2742_v7 = vpop.f32.mrb[11].mxu0  ;;  %2750 = vmatprep.mubr.msk.f32.mxu1 %vm562_vm2, %v1454_v6 }
 0x4db   : > { %v1530_v8 = vpop.f32.mrb[10].mxu1 }
 0x4dc   : > { %v2938_v11 = vpop.eup %2937  ;;  %v2747_v12 = vpop.f32.mrb[11].mxu1  ;;  %2751 = vmatmul.mubr.msk.f32.vlgmr.msra.gmra.mrb[8].mxu1 %vm562_vm2, %v1530_v8 }
 0x4dd   : > { %v1284_v13 = vmul.f32 %v2938_v11, %v2930_v48  ;;  %2764 = vmatpush3.msra.mxu1 %v1771_v2 }
 0x4de   : > { %2773 = vmatprep.subr.mxu1 %v3185_v5 }
 0x4df   : > { %1292 = vst.msk [vmem:[%s3643_s19 + $0x10] sm:$0xff] %vm562_vm2, %v1284_v13  ;;  %2771 = vmatmul.mubr.msk.f32.vlgmr.msra.gmra.mrb[16].mxu0 %vm562_vm2, %v1284_v13 }
 0x4e0   : > { %2784 = vmatpush3.msra.mxu0 %v2093_v10  ;;  %2785 = vmatprep.mubr.msk.f32.mxu0 %vm3186_vm1, %v3185_v5 }
 0x4e1   : > { %2788 = vmatprep.subr.mxu0 %v3185_v5 }
 0x4fe   : > { %v1270_v14 = vpop.xlane.xlu0 %1269 }
 0x4ff   : > { %2939 = vrcp.f32 %v1270_v14 }
 0x502   : > { %v1273_v15 = vpop.xlane.xlu0 %1272 }
 0x503   : > { %2941 = vrcp.f32 %v1273_v15 }
 0x506   : > { %v1261_v16 = vpop.xlane.xlu1 %1260  ;;  %v1932_v25 = vpop.permute.xlu0 %1931 }
 0x507   : > { %2943 = vrcp.f32 %v1261_v16 }
 0x509   : > { %v2940_v17 = vpop.eup %2939 }
 0x50a   : > { %v1288_v18 = vmul.f32 %v2940_v17, %v2932_v63  ;;  %v2169_v4 = vpop.permute.xlu1 %2168 }
 0x50c   : > { %1296 = vst.msk [vmem:[%s3643_s19 + $0x30] sm:$0xff] %vm562_vm2, %v1288_v18  ;;  %v1690_v19 = vpop.f32.mrb[12].mxu0 }
 0x50d   : > { %v2942_v20 = vpop.eup %2941  ;;  %v2757_v21 = vpop.f32.mrb[13].mxu0  ;;  %2765 = vmatprep.mubr.msk.f32.mxu1 %vm562_vm2, %v1690_v19 }
 0x50e   : > { %v1289_v22 = vmul.f32 %v2942_v20, %v2934_v1 }
 0x510   : > { %1297 = vst.msk [vmem:[%s3643_s19 + $0x38] sm:$0xff] %vm562_vm2, %v1289_v22  ;;  %v1766_v23 = vpop.f32.mrb[14].mxu0 }
 0x511   : > { %v2944_v24 = vpop.eup %2943  ;;  %v2762_v26 = vpop.f32.mrb[15].mxu0  ;;  %2766 = vmatmul.mubr.msk.f32.vlgmr.msra.gmra.mrb[8].mxu1 %vm562_vm2, %v1766_v23 }
 0x512   : > { %v1285_v27 = vmul.f32 %v2944_v24, %v2936_v54  ;;  %2774 = vmatpush3.msra.mxu1 %v1932_v25  ;;  %2775 = vmatprep.mubr.msk.f32.mxu1 %vm3186_vm1, %v3185_v5 }
 0x513   : > { %2778 = vmatprep.subr.mxu1 %v2008_v28 }
 0x514   : > { %1293 = vst.msk [vmem:[%s3643_s19 + $0x18] sm:$0xff] %vm562_vm2, %v1285_v27  ;;  %2786 = vmatmul.mubr.msk.f32.vlgmr.msra.gmra.mrb[18].mxu0 %vm562_vm2, %v1285_v27 }
 0x515   : > { %2789 = vmatpush3.msra.mxu0 %v2169_v4  ;;  %2776 = vmatmul.mubr.msk.f32.vlgmr.msra.gmra.mrb[12].mxu1 %vm562_vm2, %v1288_v18 }
 0x516   : > { %2790 = vmatprep.mubr.msk.f32.mxu0 %vm3186_vm1, %v3185_v5  ;;  %2779 = vmatpush3.msra.mxu1 %v2008_v28 }
 0x517   : > { %2793 = vmatprep.subr.mxu1 %v2245_v29 }
 0x518   : > { %2791 = vmatmul.mubr.msk.f32.vlgmr.msra.gmra.mrb[20].mxu0 %vm562_vm2, %v1289_v22 }
 0x5b2   : > { %v1927_v30 = vpop.f32.mrb[16].mxu0 }
 0x5b3   : > { %v2772_v31 = vpop.f32.mrb[17].mxu0  ;;  %2780 = vmatprep.mubr.msk.f32.mxu1 %vm562_vm2, %v1927_v30 }
 0x5e7   : > { %v2164_v32 = vpop.f32.mrb[18].mxu0 }
 0x5e8   : > { %v2003_v33 = vpop.f32.mrb[12].mxu1  ;;  %v2787_v34 = vpop.f32.mrb[19].mxu0 }
 0x5e9   : > { %v2777_v35 = vpop.f32.mrb[13].mxu1  ;;  %2781 = vmatmul.mubr.msk.f32.vlgmr.msra.gmra.mrb[8].mxu1 %vm562_vm2, %v2003_v33 }
 0x5ea   : > { %2794 = vmatpush3.msra.mxu1 %v2245_v29  ;;  %2795 = vmatprep.mubr.msk.f32.mxu1 %vm562_vm2, %v2164_v32 }
 0x5eb   : > { %v2240_v5 = vpop.f32.mrb[20].mxu0 }
 0x5ec   : > { %v2792_v36 = vpop.f32.mrb[21].mxu0 }
 0x5f1   : > { %2796 = vmatmul.mubr.msk.f32.vlgmr.msra.gmra.mrb[8].mxu1 %vm562_vm2, %v2240_v5 }
 0x6c4   : > { %v2797_v38 = vpop.f32.mrb[8].mxu1 }
 0x6c5   : > { %v2806_v39 = vadd.f32 %v2797_v38, %v2597_v37  ;;  %v2318_v40 = vpop.f32.mrb[9].mxu1 }
 0x6c6   : > { %v2807_v41 = vadd.f32 %v2597_v37, %v2318_v40 }
 0x6c7   : > { %v2333_v42 = vsel %vm2329_vm7, %v2806_v39, 0.0 }
 0x6c8   : > { %2334 = vadd.xlane.f32.xlu1 %v2333_v42  ;;  %v2330_v43 = vsel %vm2329_vm7, %v2807_v41, 0.0 }
 0x6c9   : > { %2331 = vadd.xlane.f32.xlu0 %v2330_v43 }
 0x755   : > { %v2335_v44 = vpop.xlane.xlu1 %2334 }
 0x756   : > { %v2338_v45 = vmul.f32 0.03125, %v2335_v44  ;;  %v2332_v46 = vpop.xlane.xlu0 %2331 }
 0x757   : > { %v2337_v47 = vmul.f32 0.03125, %v2332_v46 }
 0x758   : > { %v2340_v48 = vsub.f32 %v2806_v39, %v2338_v45 }
 0x759   : > { %v2339_v49 = vsub.f32 %v2807_v41, %v2337_v47 }
 0x75a   : > { %v2342_v52 = vmul.f32 %v2340_v48, %v2340_v48 }
 0x75b   : > { %v2341_v50 = vmul.f32 %v2339_v49, %v2339_v49 }
 0x75c   : > { %v2346_v53 = vsel %vm2329_vm7, %v2342_v52, 0.0 }
 0x75d   : > { %v2343_v51 = vsel %vm2329_vm7, %v2341_v50, 0.0 }
 0x75e   : > { %2344 = vadd.xlane.f32.xlu0 %v2343_v51 }
 0x762   : > { %2347 = vadd.xlane.f32.xlu0 %v2346_v53 }
 0x763   : > { %3078 = shalt.err (!%p3075_p7)
}
 0x764   : > { %s3079_s15 = scalar_lea.hbm %s3718_s20, 1024  ;;  %s3083_s19 = scalar_lea.hbm %s3822_s10, 2048 }
 0x765   : > { %p3080_p9 = scmp.ne.s32.totalorder %s3718_s20, %s3079_s15  ;;  %p3084_p11 = scmp.lt.u32.totalorder %s3718_s20, %s3822_s10 }
 0x766   : > { %p3085_p2 = scmp.lt.u32.totalorder %s3083_s19, %s3079_s15  ;;  %p3087_p1 = scmp.lt.u32.totalorder %s3079_s15, %s3718_s20 }
 0x767   : > { %p3081_p0 = pnand %p3080_p9, %p3859_p13 }
 0x768   : > { %p3086_p12 = por %p3085_p2, %p3084_p11 }
 0x769   : > { %p3082_p8 = pneg %p3081_p0 }
 0x76a   : > { %p3088_p6 = por %p3087_p1, %p3086_p12 }
 0x76c   : > { %p3089_p10 = pnand %p3088_p6, %p3082_p8 }
 0x76e   : > { %3092 = shalt.err (!%p3089_p10)
}
 0x76f   : > { %s3200_s28 = smov 128   ;;  %s3201_s22 = smov 8   ;;  %v2616_v63 = vld [vmem:[%s3819_s7] ss:$0 sm:$0xff] }
 0x770   : > { %2829 = dma.vmem_to_hbm [thread:$0]  (%p3859_p13), %s3720_s27, 1024, %s3718_s20, %s2383_s24, %s3200_s28, %s3200_s28, %s3201_s22  }
 0x771   : > { %v2617_v1 = vld [vmem:[%s3820_s8] ss:$0 sm:$0xff]  ;;  %s2629_s27 = sshll.u32 %s3279_s17, 8  ;;  %s450_s20 = scalar_lea.vmem [#allocation10], %s2572_s4 }
 0x772   : > { %s2396_s24 = sshll.u32 %s450_s20, 4  ;;  %s3762_s15 = scalar_lea.hbm %s3821_s9, %s2629_s27  ;;  %s3764_s24 = int_to_ptr.vmem [resolvable:$true] %s2396_s24 }
 0x773   : > { %s2378_s17 = scalar_lea.sflag [#allocation4], %s3482_s25  ;;  %s3093_s21 = scalar_lea.vmem %s3764_s24, 256 }
 0x774   : > { %p3094_p4 = scmp.ne.s32.totalorder %s3764_s24, %s3093_s21  ;;  %s3202_s4 = smov [#allocation10]  }
 0x775   : > { %s3097_s29 = sshll.u32 %s3202_s4, 4  ;;  %s3098_s29 = int_to_ptr.vmem [resolvable:$false] %s3097_s29 }
 0x776   : > { %p3095_p5 = pnand %p3094_p4, %p3859_p13  ;;  %s3099_s19 = scalar_lea.vmem %s3098_s29, 512 }
 0x777   : > { %p3100_p7 = scmp.lt.s32.totalorder %s3764_s24, %s3098_s29  ;;  %p3101_p9 = scmp.lt.s32.totalorder %s3099_s19, %s3093_s21 }
 0x778   : > { %p3096_p3 = pneg %p3095_p5 }
 0x779   : > { %p3102_p0 = por %p3101_p9, %p3100_p7 }
 0x77b   : > { %p3103_p8 = pnand %p3102_p0, %p3096_p3 }
 0x7eb   : > { %v2345_v55 = vpop.xlane.xlu0 %2344 }
 0x7ec   : > { %v2349_v56 = vmul.f32 0.03125, %v2345_v55 }
 0x7ee   : > { %v2351_v57 = vadd.f32 1e-05, %v2349_v56 }
 0x7ef   : > { %v2348_v59 = vpop.xlane.xlu0 %2347 }
 0x7f0   : > { %2945 = vrsqrt.f32 %v2351_v57  ;;  %v2350_v60 = vmul.f32 0.03125, %v2348_v59 }
 0x7f2   : > { %v2352_v62 = vadd.f32 1e-05, %v2350_v60 }
 0x7f4   : > { %2947 = vrsqrt.f32 %v2352_v62 }
 0x7fa   : > { %v2946_v9 = vpop.eup %2945 }
 0x7fb   : > { %v2355_v0 = vmul.f32 %v2946_v9, %v2339_v49 }
 0x7fd   : > { %v2364_v61 = vmul.f32 %v2616_v63, %v2355_v0 }
 0x7fe   : > { %v2948_v54 = vpop.eup %2947 }
 0x7ff   : > { %v2373_v58 = vadd.f32 %v2617_v1, %v2364_v61  ;;  %v2356_v2 = vmul.f32 %v2948_v54, %v2340_v48 }
 0x801   : > { %v2365_v3 = vmul.f32 %v2616_v63, %v2356_v2  ;;  %2375 = vst.msk [vmem:[%s450_s20] sm:$0xff] %vm2329_vm7, %v2373_v58 }
 0x803   : > { %v2374_v6 = vadd.f32 %v2617_v1, %v2365_v3 }
 0x805   : > { %2376 = vst.msk [vmem:[%s450_s20 + $0x8] sm:$0xff] %vm2329_vm7, %v2374_v6 }
 0x806   : > { %3106 = shalt.err (!%p3103_p8)
}
 0x807   : > { %s3107_s18 = scalar_lea.hbm %s3762_s15, 256  ;;  %s3111_s23 = scalar_lea.hbm %s3821_s9, 512 }
 0x808   : > { %p3108_p11 = scmp.ne.s32.totalorder %s3762_s15, %s3107_s18  ;;  %p3112_p1 = scmp.lt.u32.totalorder %s3762_s15, %s3821_s9 }
 0x809   : > { %p3113_p6 = scmp.lt.u32.totalorder %s3111_s23, %s3107_s18  ;;  %p3115_p4 = scmp.lt.u32.totalorder %s3107_s18, %s3762_s15 }
 0x80a   : > { %p3109_p2 = pnand %p3108_p11, %p3859_p13 }
 0x80b   : > { %p3114_p10 = por %p3113_p6, %p3112_p1 }
 0x80c   : > { %p3110_p12 = pneg %p3109_p2 }
 0x80d   : > { %p3116_p5 = por %p3115_p4, %p3114_p10 }
 0x80f   : > { %p3117_p3 = pnand %p3116_p5, %p3110_p12 }
 0x811   : > { %3120 = shalt.err (!%p3117_p3)
}
 0x812   : > { %2828 = dma.vmem_to_hbm [thread:$0]  (%p3859_p13), %s3764_s24, 256, %s3762_s15, %s2378_s17, %s3200_s28, %s3200_s28, %s3201_s22  }
 0x813 PF: > { %s3860_s27 = sld [smem:[#allocation19_spill]]  ;;  %s3861_s20 = sld [smem:[#allocation21_spill]] }
 0x814   : > { %p3863_p9 = scmp.ge.s32.totalorder %s3175_s16, 2 }
 0x819   : > { %s2428_s13 = sand.u32 1, %s3860_s27   ;;  %p3862_p7 = scmp.ne.s32.totalorder %s3861_s20, 0 }
 0x81a   : > { %s2429_s0 = scalar_lea.sflag [#allocation4], %s2428_s13 }
 0x81b   : > { %p2847_p0 = pnand %p3863_p9, %p3862_p7 }
 0x81d   : > { %3154 = dma.done.wait (!%p2847_p0), %s2429_s0, 256  }
 0x81e   : > { %3156 = vsyncadd (!%p2847_p0), %s2429_s0, 4294967040  ;;  %s2438_s30 = scalar_lea.sflag [#allocation12], %s2428_s13 }
 0x81f   : > { %3158 = dma.done.wait (!%p2847_p0), %s2438_s30, 1024  }
 0x820   : > { %3160 = vsyncadd (!%p2847_p0), %s2438_s30, 4294966272  ;;  %s3864_s16 = sld [smem:[#allocation22_spill]]  ;;  %s3865_s25 = sld [smem:[#allocation20_spill]] }
 0x821   : > { %s3866_s15 = sld [smem:[#allocation23_spill]]  ;;  %s3867_s13 = smov %s3167_s14 }
 0x826   : > { %p31_p13 = scmp.ge.s32.totalorder %s3864_s16, 4   ;;  %s3868_s14 = smov %s3865_s25 }
 0x828   :  { %33 = sbr.rel (!%p31_p13) target bundleno = 14 (0xe), region = 142 }
 0x82f   :  { %2443 = vsyncpa [#allocation3], 1 }
 0x830   :  { %2445 = vsyncpa [#allocation3 + $0x1], 1 }
 0x831   :  { %2446 = vsyncpa [#allocation6], 1 }
 0x832   :  { %2448 = vsyncpa [#allocation6 + $0x1], 1 }
 0x833   :  { %2449 = vsyncpa [#allocation9], 1 }
 0x834   :  { %2450 = vsyncpa [#allocation4], 1 }
 0x835   :  { %2452 = vsyncpa [#allocation4 + $0x1], 1 }
 0x836   :  { %2453 = vsyncpa [#allocation12], 1 }
 0x837   :  { %2455 = vsyncpa [#allocation12 + $0x1], 1 }

</bundles_post_ra>
